<compile_context>
chip_gen: v7x
topology: tpu7x:2x2x1
jax: 0.10.0
libtpu: 0.0.40
codegen_flags: <defaults>
</compile_context>

<pallas_src>
import functools

import jax
import jax.numpy as jnp
from jax.experimental import pallas as pl
from jax.experimental.pallas import tpu as pltpu


# ----------------------------------------------------------------------------
# helpers
# ----------------------------------------------------------------------------
def _round_up(x, m):
    return ((x + m - 1) // m) * m


def _pad_to(a, axis, target):
    pad = target - a.shape[axis]
    if pad == 0:
        return a
    widths = [(0, 0)] * a.ndim
    widths[axis] = (0, pad)
    return jnp.pad(a, widths)


# ----------------------------------------------------------------------------
# batched linear kernel:  out = x @ w + b   (rows parallel, cols parallel)
# used for the hoisted input-projection table and the hoisted FC projection.
# ----------------------------------------------------------------------------
def _linear_kernel(x_ref, w_ref, b_ref, out_ref):
    out_ref[...] = (
        jnp.dot(x_ref[...], w_ref[...], preferred_element_type=jnp.float32)
        + b_ref[...]
    ).astype(out_ref.dtype)


def linear_pallas(x, w, b, *, compute_dtype=jnp.float32):
    """x: (R, K), w: (K, N) with N a multiple of 128, b: (N,) -> (R, N) f32."""
    R, K = x.shape
    Kw, N = w.shape
    assert K == Kw and N % 128 == 0

    tr = 256 if R >= 256 else _round_up(R, 8)      # sublane-aligned row tile
    r_pad = _round_up(R, tr)
    tn = 512 if N % 512 == 0 else (256 if N % 256 == 0 else 128)

    x_p = _pad_to(x, 0, r_pad).astype(compute_dtype)
    w_c = w.astype(compute_dtype)
    b2 = b.reshape(1, N).astype(jnp.float32)

    out = pl.pallas_call(
        _linear_kernel,
        out_shape=jax.ShapeDtypeStruct((r_pad, N), jnp.float32),
        grid_spec=pltpu.PrefetchScalarGridSpec(
            num_scalar_prefetch=0,
            grid=(r_pad // tr, N // tn),
            in_specs=[
                pl.BlockSpec((tr, K), lambda r, n: (r, 0)),   # x rows
                pl.BlockSpec((K, tn), lambda r, n: (0, n)),   # weight cols
                pl.BlockSpec((1, tn), lambda r, n: (0, n)),   # bias cols
            ],
            out_specs=pl.BlockSpec((tr, tn), lambda r, n: (r, n)),
        ),
        compiler_params=pltpu.CompilerParams(
            dimension_semantics=("parallel", "parallel")),
    )(x_p, w_c, b2)
    return out[:R]


# ----------------------------------------------------------------------------
# LSTM recurrence kernel: per grid step, an unrolled chunk of Tt timesteps.
# gates = xproj_t + h_prev @ W_hh^T ; h/c carried in VMEM scratch.
# ----------------------------------------------------------------------------
def _lstm_kernel(xproj_ref, whh_ref, h_out_ref, h_sc, c_sc):
    tt = h_out_ref.shape[0]
    hp = h_out_ref.shape[2]            # multiple of 128 -> lane-aligned slices

    @pl.when(pl.program_id(0) == 0)
    def _():
        h_sc[...] = jnp.zeros_like(h_sc)
        c_sc[...] = jnp.zeros_like(c_sc)

    whh = whh_ref[...]                 # (hp, 4*hp), hoisted load

    def step(t, carry):
        h, c = carry                   # f32 (B_pad, hp)
        gates = xproj_ref[t] + jnp.dot(
            h.astype(whh.dtype), whh, preferred_element_type=jnp.float32)
        i_g = jax.nn.sigmoid(gates[:, 0 * hp:1 * hp])
        f_g = jax.nn.sigmoid(gates[:, 1 * hp:2 * hp])
        g_g = jnp.tanh(gates[:, 2 * hp:3 * hp])
        o_g = jax.nn.sigmoid(gates[:, 3 * hp:4 * hp])
        c_new = f_g * c + i_g * g_g
        h_new = o_g * jnp.tanh(c_new)
        h_out_ref[t] = h_new.astype(h_out_ref.dtype)
        return h_new, c_new

    h_f, c_f = jax.lax.fori_loop(0, tt, step, (h_sc[...], c_sc[...]),
                                 unroll=True)
    h_sc[...] = h_f
    c_sc[...] = c_f


def lstm_pallas(xproj, whh_t, *, hp, tt, compute_dtype=jnp.float32):
    """xproj: (Tp, Bp, 4*hp) f32 (bias already folded in); whh_t: (hp, 4*hp)."""
    t_pad, b_pad, g = xproj.shape
    whh_c = whh_t.astype(compute_dtype)
    return pl.pallas_call(
        _lstm_kernel,
        out_shape=jax.ShapeDtypeStruct((t_pad, b_pad, hp), jnp.float32),
        grid_spec=pltpu.PrefetchScalarGridSpec(
            num_scalar_prefetch=0,
            grid=(t_pad // tt,),
            in_specs=[
                pl.BlockSpec((tt, b_pad, g), lambda s: (s, 0, 0)),  # xproj chunk
                pl.BlockSpec((hp, g), lambda s: (0, 0)),            # W_hh^T (resident)
            ],
            out_specs=pl.BlockSpec((tt, b_pad, hp), lambda s: (s, 0, 0)),
            scratch_shapes=[
                pltpu.VMEM((b_pad, hp), jnp.float32),   # h state
                pltpu.VMEM((b_pad, hp), jnp.float32),   # c state
            ],
        ),
        compiler_params=pltpu.CompilerParams(
            dimension_semantics=("arbitrary",)),        # serial recurrence
    )(xproj, whh_c)


# ----------------------------------------------------------------------------
# full forward (matches PyTorch NameClassifier.forward, batch_first=True)
# ----------------------------------------------------------------------------
def name_classifier_forward(x_ids, params, *, compute_dtype=jnp.float32,
                            time_chunk=16):
    """x_ids: int32 (B, T) token ids.  Returns logits (B, T, vocab), f32."""
    emb_table = params["embedding"]        # (V, E), row 0 zeroed (padding_idx=0)
    w_ih = params["w_ih"]                  # (4H, E)
    w_hh = params["w_hh"]                  # (4H, H)
    b_ih = params["b_ih"]                  # (4H,)
    b_hh = params["b_hh"]                  # (4H,)
    w_fc = params["w_fc"]                  # (V, H)
    b_fc = params["b_fc"]                  # (V,)

    B, T = x_ids.shape
    V, E = emb_table.shape
    H = w_hh.shape[1]

    Hp = _round_up(H, 128)                 # lane-aligned gate / hidden width
    Vp = _round_up(V, 128)                 # lane-dense logits
    Bp = _round_up(B, 8)                   # sublane-aligned batch
    tt = min(time_chunk, T)                # timesteps per grid step
    Tp = _round_up(T, tt)

    # Gate-padded weights: each of the i/f/g/o blocks is padded H -> Hp so the
    # in-kernel gate slices land on 128-lane boundaries.
    wih_t = _pad_to(w_ih.T.reshape(E, 4, H), 2, Hp).reshape(E, 4 * Hp)
    whh_t = _pad_to(_pad_to(w_hh.T.reshape(H, 4, H), 2, Hp), 0, Hp)
    whh_t = whh_t.reshape(Hp, 4 * Hp)
    bias = _pad_to((b_ih + b_hh).reshape(4, H), 1, Hp).reshape(4 * Hp)
    wfc_t = _pad_to(_pad_to(w_fc.T, 0, Hp), 1, Vp)          # (Hp, Vp)
    bfc = _pad_to(b_fc, 0, Vp)                              # (Vp,)

    # ---- Embedding + input projection, hoisted out of the recurrence -------
    if V <= Tp * Bp:
        # Exact rewrite:  E[ids] @ W_ih^T + b  ==  (E @ W_ih^T + b)[ids].
        # Project the whole (small) vocab once, then gather 4*Hp-wide rows in
        # time-major layout.  Much cheaper than projecting every token.
        proj_table = linear_pallas(emb_table, wih_t, bias,
                                   compute_dtype=compute_dtype)   # (V, 4*Hp)
        xproj = proj_table[x_ids.T]                               # (T, B, 4*Hp)
        xproj = _pad_to(_pad_to(xproj, 0, Tp), 1, Bp)             # (Tp, Bp, 4*Hp)
    else:
        # Large-vocab fallback: gather embeddings (time-major), then one big
        # batched matmul for the input projection.
        emb_tm = emb_table[x_ids.T]                               # (T, B, E)
        emb_tm = _pad_to(_pad_to(emb_tm, 0, Tp), 1, Bp)           # (Tp, Bp, E)
        xproj = linear_pallas(emb_tm.reshape(Tp * Bp, E), wih_t, bias,
                              compute_dtype=compute_dtype)
        xproj = xproj.reshape(Tp, Bp, 4 * Hp)

    # ---- Serial LSTM recurrence (only h @ W_hh^T + elementwise) ------------
    hs = lstm_pallas(xproj, whh_t, hp=Hp, tt=tt, compute_dtype=compute_dtype)

    # ---- Output projection hoisted out: one (Tp*Bp, Hp) @ (Hp, Vp) matmul --
    logits = linear_pallas(hs.reshape(Tp * Bp, Hp), wfc_t, bfc,
                           compute_dtype=compute_dtype)
    logits = logits.reshape(Tp, Bp, Vp)[:T, :B, :V]
    return jnp.transpose(logits, (1, 0, 2))                 # (B, T, V)


# ----------------------------------------------------------------------------
# params + pure-JAX reference (same math as torch.nn.LSTM, batch_first=True)
# ----------------------------------------------------------------------------
def make_params(key, vocab_size, embed_dim, hidden_dim):
    ks = jax.random.split(key, 7)
    scale = 0.1
    emb = scale * jax.random.normal(ks[0], (vocab_size, embed_dim), jnp.float32)
    emb = emb.at[0].set(0.0)                                 # padding_idx=0
    return {
        "embedding": emb,
        "w_ih": scale * jax.random.normal(ks[1], (4 * hidden_dim, embed_dim), jnp.float32),
        "w_hh": scale * jax.random.normal(ks[2], (4 * hidden_dim, hidden_dim), jnp.float32),
        "b_ih": scale * jax.random.normal(ks[3], (4 * hidden_dim,), jnp.float32),
        "b_hh": scale * jax.random.normal(ks[4], (4 * hidden_dim,), jnp.float32),
        "w_fc": scale * jax.random.normal(ks[5], (vocab_size, hidden_dim), jnp.float32),
        "b_fc": scale * jax.random.normal(ks[6], (vocab_size,), jnp.float32),
    }


def reference_forward(x_ids, params):
    emb = params["embedding"][x_ids]                         # (B, T, E)
    B, T, E = emb.shape
    H = params["w_hh"].shape[1]
    wih_t, whh_t = params["w_ih"].T, params["w_hh"].T
    bias = params["b_ih"] + params["b_hh"]

    def step(carry, x_t):
        h, c = carry
        g = x_t @ wih_t + h @ whh_t + bias
        i = jax.nn.sigmoid(g[:, 0 * H:1 * H])
        f = jax.nn.sigmoid(g[:, 1 * H:2 * H])
        gg = jnp.tanh(g[:, 2 * H:3 * H])
        o = jax.nn.sigmoid(g[:, 3 * H:4 * H])
        c = f * c + i * gg
        h = o * jnp.tanh(c)
        return (h, c), h

    h0 = jnp.zeros((B, H), jnp.float32)
    c0 = jnp.zeros((B, H), jnp.float32)
    _, hs = jax.lax.scan(step, (h0, c0), jnp.transpose(emb, (1, 0, 2)))
    hs = jnp.transpose(hs, (1, 0, 2))                        # (B, T, H)
    return hs @ params["w_fc"].T + params["b_fc"]


if __name__ == "__main__":
    VOCAB, EMBED, HIDDEN = 16, 32, 32
    B, T = 2, 8

    key = jax.random.PRNGKey(0)
    pkey, xkey = jax.random.split(key)
    params = make_params(pkey, VOCAB, EMBED, HIDDEN)
    x_ids = jax.random.randint(xkey, (B, T), 0, VOCAB, dtype=jnp.int32)

    fwd = jax.jit(functools.partial(name_classifier_forward))
    out = jax.block_until_ready(fwd(x_ids, params))

    ref = reference_forward(x_ids, params)
    assert out.shape == (B, T, VOCAB)
    assert jnp.allclose(out, ref, atol=1e-4, rtol=1e-4)

    print("KERNEL_OK")
</pallas_src>

<mosaic_0001>
module attributes {stable_mosaic.version = 11 : i64} {
  func.func @_linear_kernel(%arg0: i32, %arg1: i32, %arg2: memref<16x32xf32, #tpu.memory_space<vmem>>, %arg3: memref<32x512xf32, #tpu.memory_space<vmem>>, %arg4: memref<1x512xf32, #tpu.memory_space<vmem>>, %arg5: memref<16x512xf32, #tpu.memory_space<vmem>>) attributes {dimension_semantics = [#tpu.dimension_semantics<parallel>, #tpu.dimension_semantics<parallel>], iteration_bounds = array<i64: 1, 1>, scalar_prefetch = 0 : i64, scratch_operands = 0 : i64, tpu.core_type = #tpu.core_type<tc>, window_params = [{transform_indices = @transform_0, window_bounds = array<i64: 16, 32>}, {transform_indices = @transform_1, window_bounds = array<i64: 32, 512>}, {transform_indices = @transform_2, window_bounds = array<i64: 1, 512>}, {transform_indices = @transform_3, window_bounds = array<i64: 16, 512>}]} {
    %c0 = arith.constant 0 : index
    %c0_0 = arith.constant 0 : index
    %0 = vector.load %arg2[%c0, %c0_0] : memref<16x32xf32, #tpu.memory_space<vmem>>, vector<16x32xf32>
    %c0_1 = arith.constant 0 : index
    %c0_2 = arith.constant 0 : index
    %1 = vector.load %arg3[%c0_1, %c0_2] : memref<32x512xf32, #tpu.memory_space<vmem>>, vector<32x512xf32>
    %cst = arith.constant dense<0.000000e+00> : vector<16x512xf32>
    %2 = tpu.matmul %0, %1, %cst {dimension_numbers = #tpu.dot_dimension_numbers<[1], [0], [0], [1], [0, 0, 1, 1], [], []>} : vector<16x32xf32>, vector<32x512xf32>, vector<16x512xf32> -> vector<16x512xf32>
    %c0_3 = arith.constant 0 : index
    %c0_4 = arith.constant 0 : index
    %3 = vector.load %arg4[%c0_3, %c0_4] : memref<1x512xf32, #tpu.memory_space<vmem>>, vector<1x512xf32>
    %4 = vector.broadcast %3 : vector<1x512xf32> to vector<16x512xf32>
    %5 = arith.addf %2, %4 : vector<16x512xf32>
    %c0_5 = arith.constant 0 : index
    %c0_6 = arith.constant 0 : index
    %6 = vector.load %arg5[%c0_5, %c0_6] : memref<16x512xf32, #tpu.memory_space<vmem>>, vector<16x512xf32>
    tpu.vector_store %arg5[%c0_5, %c0_6], %5 {strides = array<i32>} : memref<16x512xf32, #tpu.memory_space<vmem>>, vector<16x512xf32>,
    return
  }
  func.func @transform_0(%arg0: i32, %arg1: i32) -> (i32, i32) {
    %c0_i32 = arith.constant 0 : i32
    %c0_i32_0 = arith.constant 0 : i32
    return %arg0, %c0_i32 : i32, i32
  }
  func.func @transform_1(%arg0: i32, %arg1: i32) -> (i32, i32) {
    %c0_i32 = arith.constant 0 : i32
    %c0_i32_0 = arith.constant 0 : i32
    return %c0_i32, %arg1 : i32, i32
  }
  func.func @transform_2(%arg0: i32, %arg1: i32) -> (i32, i32) {
    %c0_i32 = arith.constant 0 : i32
    %c0_i32_0 = arith.constant 0 : i32
    return %c0_i32, %arg1 : i32, i32
  }
  func.func @transform_3(%arg0: i32, %arg1: i32) -> (i32, i32) {
    %c0_i32 = arith.constant 0 : i32
    return %arg0, %arg1 : i32, i32
  }
}

module attributes {stable_mosaic.version = 11 : i64} {
  func.func @_lstm_kernel(%arg0: i32, %arg1: memref<8x8x512xf32, #tpu.memory_space<vmem>>, %arg2: memref<128x512xf32, #tpu.memory_space<vmem>>, %arg3: memref<8x8x128xf32, #tpu.memory_space<vmem>>, %arg4: memref<8x128xf32, #tpu.memory_space<vmem>>, %arg5: memref<8x128xf32, #tpu.memory_space<vmem>>) attributes {dimension_semantics = [#tpu.dimension_semantics<arbitrary>], iteration_bounds = array<i64: 1>, scalar_prefetch = 0 : i64, scratch_operands = 2 : i64, tpu.core_type = #tpu.core_type<tc>, window_params = [{transform_indices = @transform_0, window_bounds = array<i64: 8, 8, 512>}, {pipeline_mode = #tpu.pipeline_mode<synchronous>, transform_indices = @transform_1, window_bounds = array<i64: 128, 512>}, {transform_indices = @transform_2, window_bounds = array<i64: 8, 8, 128>}]} {
    %c0_i32 = arith.constant 0 : i32
    %0 = arith.cmpi eq, %arg0, %c0_i32 : i32
    %1 = arith.extui %0 : i1 to i32
    %c0_i32_0 = arith.constant 0 : i32
    %2 = arith.cmpi ne, %1, %c0_i32_0 : i32
    scf.if %2 {
      %cst_74 = arith.constant 0.000000e+00 : f32
      %280 = vector.broadcast %cst_74 : f32 to vector<8x128xf32>
      %c0_75 = arith.constant 0 : index
      %c0_76 = arith.constant 0 : index
      %281 = vector.load %arg4[%c0_75, %c0_76] : memref<8x128xf32, #tpu.memory_space<vmem>>, vector<8x128xf32>
      tpu.vector_store %arg4[%c0_75, %c0_76], %280 {strides = array<i32>} : memref<8x128xf32, #tpu.memory_space<vmem>>, vector<8x128xf32>,
      %cst_77 = arith.constant 0.000000e+00 : f32
      %282 = vector.broadcast %cst_77 : f32 to vector<8x128xf32>
      %c0_78 = arith.constant 0 : index
      %c0_79 = arith.constant 0 : index
      %283 = vector.load %arg5[%c0_78, %c0_79] : memref<8x128xf32, #tpu.memory_space<vmem>>, vector<8x128xf32>
      tpu.vector_store %arg5[%c0_78, %c0_79], %282 {strides = array<i32>} : memref<8x128xf32, #tpu.memory_space<vmem>>, vector<8x128xf32>,
    } else {
    }
    %c0 = arith.constant 0 : index
    %c0_1 = arith.constant 0 : index
    %3 = vector.load %arg2[%c0, %c0_1] : memref<128x512xf32, #tpu.memory_space<vmem>>, vector<128x512xf32>
    %c0_2 = arith.constant 0 : index
    %c0_3 = arith.constant 0 : index
    %4 = vector.load %arg4[%c0_2, %c0_3] : memref<8x128xf32, #tpu.memory_space<vmem>>, vector<8x128xf32>
    %c0_4 = arith.constant 0 : index
    %c0_5 = arith.constant 0 : index
    %5 = vector.load %arg5[%c0_4, %c0_5] : memref<8x128xf32, #tpu.memory_space<vmem>>, vector<8x128xf32>
    %c0_i32_6 = arith.constant 0 : i32
    %6 = arith.index_cast %c0_i32_6 : i32 to index
    %c0_7 = arith.constant 0 : index
    %c0_8 = arith.constant 0 : index
    %7 = vector.load %arg1[%6, %c0_7, %c0_8] : memref<8x8x512xf32, #tpu.memory_space<vmem>>, vector<1x8x512xf32>
    %8 = vector.shape_cast %7 : vector<1x8x512xf32> to vector<8x512xf32>
    %cst = arith.constant dense<0.000000e+00> : vector<8x512xf32>
    %9 = tpu.matmul %4, %3, %cst {dimension_numbers = #tpu.dot_dimension_numbers<[1], [0], [0], [1], [0, 0, 1, 1], [], []>} : vector<8x128xf32>, vector<128x512xf32>, vector<8x512xf32> -> vector<8x512xf32>
    %10 = arith.addf %8, %9 : vector<8x512xf32>
    %11 = vector.extract_strided_slice %10 {offsets = [0, 0], sizes = [8, 128], strides = [1, 1]} : vector<8x512xf32> to vector<8x128xf32>
    %12 = arith.negf %11 : vector<8x128xf32>
    %13 = math.exp %12 : vector<8x128xf32>
    %cst_9 = arith.constant 1.000000e+00 : f32
    %14 = vector.broadcast %cst_9 : f32 to vector<8x128xf32>
    %15 = arith.addf %14, %13 : vector<8x128xf32>
    %16 = arith.divf %14, %15 : vector<8x128xf32>
    %17 = vector.extract_strided_slice %10 {offsets = [0, 128], sizes = [8, 128], strides = [1, 1]} : vector<8x512xf32> to vector<8x128xf32>
    %18 = arith.negf %17 : vector<8x128xf32>
    %19 = math.exp %18 : vector<8x128xf32>
    %cst_10 = arith.constant 1.000000e+00 : f32
    %20 = vector.broadcast %cst_10 : f32 to vector<8x128xf32>
    %21 = arith.addf %20, %19 : vector<8x128xf32>
    %22 = arith.divf %20, %21 : vector<8x128xf32>
    %23 = vector.extract_strided_slice %10 {offsets = [0, 256], sizes = [8, 128], strides = [1, 1]} : vector<8x512xf32> to vector<8x128xf32>
    %24 = math.tanh %23 : vector<8x128xf32>
    %25 = vector.extract_strided_slice %10 {offsets = [0, 384], sizes = [8, 128], strides = [1, 1]} : vector<8x512xf32> to vector<8x128xf32>
    %26 = arith.negf %25 : vector<8x128xf32>
    %27 = math.exp %26 : vector<8x128xf32>
    %cst_11 = arith.constant 1.000000e+00 : f32
    %28 = vector.broadcast %cst_11 : f32 to vector<8x128xf32>
    %29 = arith.addf %28, %27 : vector<8x128xf32>
    %30 = arith.divf %28, %29 : vector<8x128xf32>
    %31 = arith.mulf %22, %5 : vector<8x128xf32>
    %32 = arith.mulf %16, %24 : vector<8x128xf32>
    %33 = arith.addf %31, %32 : vector<8x128xf32>
    %34 = math.tanh %33 : vector<8x128xf32>
    %35 = arith.mulf %30, %34 : vector<8x128xf32>
    %36 = arith.index_cast %c0_i32_6 : i32 to index
    %c0_12 = arith.constant 0 : index
    %c0_13 = arith.constant 0 : index
    %37 = vector.load %arg3[%36, %c0_12, %c0_13] : memref<8x8x128xf32, #tpu.memory_space<vmem>>, vector<1x8x128xf32>
    %38 = vector.shape_cast %37 : vector<1x8x128xf32> to vector<8x128xf32>
    %39 = vector.shape_cast %35 : vector<8x128xf32> to vector<1x8x128xf32>
    tpu.vector_store %arg3[%36, %c0_12, %c0_13], %39 {strides = array<i32>} : memref<8x8x128xf32, #tpu.memory_space<vmem>>, vector<1x8x128xf32>,
    %c1_i32 = arith.constant 1 : i32
    %40 = arith.index_cast %c1_i32 : i32 to index
    %c0_14 = arith.constant 0 : index
    %c0_15 = arith.constant 0 : index
    %41 = vector.load %arg1[%40, %c0_14, %c0_15] : memref<8x8x512xf32, #tpu.memory_space<vmem>>, vector<1x8x512xf32>
    %42 = vector.shape_cast %41 : vector<1x8x512xf32> to vector<8x512xf32>
    %cst_16 = arith.constant dense<0.000000e+00> : vector<8x512xf32>
    %43 = tpu.matmul %35, %3, %cst_16 {dimension_numbers = #tpu.dot_dimension_numbers<[1], [0], [0], [1], [0, 0, 1, 1], [], []>} : vector<8x128xf32>, vector<128x512xf32>, vector<8x512xf32> -> vector<8x512xf32>
    %44 = arith.addf %42, %43 : vector<8x512xf32>
    %45 = vector.extract_strided_slice %44 {offsets = [0, 0], sizes = [8, 128], strides = [1, 1]} : vector<8x512xf32> to vector<8x128xf32>
    %46 = arith.negf %45 : vector<8x128xf32>
    %47 = math.exp %46 : vector<8x128xf32>
    %cst_17 = arith.constant 1.000000e+00 : f32
    %48 = vector.broadcast %cst_17 : f32 to vector<8x128xf32>
    %49 = arith.addf %48, %47 : vector<8x128xf32>
    %50 = arith.divf %48, %49 : vector<8x128xf32>
    %51 = vector.extract_strided_slice %44 {offsets = [0, 128], sizes = [8, 128], strides = [1, 1]} : vector<8x512xf32> to vector<8x128xf32>
    %52 = arith.negf %51 : vector<8x128xf32>
    %53 = math.exp %52 : vector<8x128xf32>
    %cst_18 = arith.constant 1.000000e+00 : f32
    %54 = vector.broadcast %cst_18 : f32 to vector<8x128xf32>
    %55 = arith.addf %54, %53 : vector<8x128xf32>
    %56 = arith.divf %54, %55 : vector<8x128xf32>
    %57 = vector.extract_strided_slice %44 {offsets = [0, 256], sizes = [8, 128], strides = [1, 1]} : vector<8x512xf32> to vector<8x128xf32>
    %58 = math.tanh %57 : vector<8x128xf32>
    %59 = vector.extract_strided_slice %44 {offsets = [0, 384], sizes = [8, 128], strides = [1, 1]} : vector<8x512xf32> to vector<8x128xf32>
    %60 = arith.negf %59 : vector<8x128xf32>
    %61 = math.exp %60 : vector<8x128xf32>
    %cst_19 = arith.constant 1.000000e+00 : f32
    %62 = vector.broadcast %cst_19 : f32 to vector<8x128xf32>
    %63 = arith.addf %62, %61 : vector<8x128xf32>
    %64 = arith.divf %62, %63 : vector<8x128xf32>
    %65 = arith.mulf %56, %33 : vector<8x128xf32>
    %66 = arith.mulf %50, %58 : vector<8x128xf32>
    %67 = arith.addf %65, %66 : vector<8x128xf32>
    %68 = math.tanh %67 : vector<8x128xf32>
    %69 = arith.mulf %64, %68 : vector<8x128xf32>
    %70 = arith.index_cast %c1_i32 : i32 to index
    %c0_20 = arith.constant 0 : index
    %c0_21 = arith.constant 0 : index
    %71 = vector.load %arg3[%70, %c0_20, %c0_21] : memref<8x8x128xf32, #tpu.memory_space<vmem>>, vector<1x8x128xf32>
    %72 = vector.shape_cast %71 : vector<1x8x128xf32> to vector<8x128xf32>
    %73 = vector.shape_cast %69 : vector<8x128xf32> to vector<1x8x128xf32>
    tpu.vector_store %arg3[%70, %c0_20, %c0_21], %73 {strides = array<i32>} : memref<8x8x128xf32, #tpu.memory_space<vmem>>, vector<1x8x128xf32>,
    %c2_i32 = arith.constant 2 : i32
    %74 = arith.index_cast %c2_i32 : i32 to index
    %c0_22 = arith.constant 0 : index
    %c0_23 = arith.constant 0 : index
    %75 = vector.load %arg1[%74, %c0_22, %c0_23] : memref<8x8x512xf32, #tpu.memory_space<vmem>>, vector<1x8x512xf32>
    %76 = vector.shape_cast %75 : vector<1x8x512xf32> to vector<8x512xf32>
    %cst_24 = arith.constant dense<0.000000e+00> : vector<8x512xf32>
    %77 = tpu.matmul %69, %3, %cst_24 {dimension_numbers = #tpu.dot_dimension_numbers<[1], [0], [0], [1], [0, 0, 1, 1], [], []>} : vector<8x128xf32>, vector<128x512xf32>, vector<8x512xf32> -> vector<8x512xf32>
    %78 = arith.addf %76, %77 : vector<8x512xf32>
    %79 = vector.extract_strided_slice %78 {offsets = [0, 0], sizes = [8, 128], strides = [1, 1]} : vector<8x512xf32> to vector<8x128xf32>
    %80 = arith.negf %79 : vector<8x128xf32>
    %81 = math.exp %80 : vector<8x128xf32>
    %cst_25 = arith.constant 1.000000e+00 : f32
    %82 = vector.broadcast %cst_25 : f32 to vector<8x128xf32>
    %83 = arith.addf %82, %81 : vector<8x128xf32>
    %84 = arith.divf %82, %83 : vector<8x128xf32>
    %85 = vector.extract_strided_slice %78 {offsets = [0, 128], sizes = [8, 128], strides = [1, 1]} : vector<8x512xf32> to vector<8x128xf32>
    %86 = arith.negf %85 : vector<8x128xf32>
    %87 = math.exp %86 : vector<8x128xf32>
    %cst_26 = arith.constant 1.000000e+00 : f32
    %88 = vector.broadcast %cst_26 : f32 to vector<8x128xf32>
    %89 = arith.addf %88, %87 : vector<8x128xf32>
    %90 = arith.divf %88, %89 : vector<8x128xf32>
    %91 = vector.extract_strided_slice %78 {offsets = [0, 256], sizes = [8, 128], strides = [1, 1]} : vector<8x512xf32> to vector<8x128xf32>
    %92 = math.tanh %91 : vector<8x128xf32>
    %93 = vector.extract_strided_slice %78 {offsets = [0, 384], sizes = [8, 128], strides = [1, 1]} : vector<8x512xf32> to vector<8x128xf32>
    %94 = arith.negf %93 : vector<8x128xf32>
    %95 = math.exp %94 : vector<8x128xf32>
    %cst_27 = arith.constant 1.000000e+00 : f32
    %96 = vector.broadcast %cst_27 : f32 to vector<8x128xf32>
    %97 = arith.addf %96, %95 : vector<8x128xf32>
    %98 = arith.divf %96, %97 : vector<8x128xf32>
    %99 = arith.mulf %90, %67 : vector<8x128xf32>
    %100 = arith.mulf %84, %92 : vector<8x128xf32>
    %101 = arith.addf %99, %100 : vector<8x128xf32>
    %102 = math.tanh %101 : vector<8x128xf32>
    %103 = arith.mulf %98, %102 : vector<8x128xf32>
    %104 = arith.index_cast %c2_i32 : i32 to index
    %c0_28 = arith.constant 0 : index
    %c0_29 = arith.constant 0 : index
    %105 = vector.load %arg3[%104, %c0_28, %c0_29] : memref<8x8x128xf32, #tpu.memory_space<vmem>>, vector<1x8x128xf32>
    %106 = vector.shape_cast %105 : vector<1x8x128xf32> to vector<8x128xf32>
    %107 = vector.shape_cast %103 : vector<8x128xf32> to vector<1x8x128xf32>
    tpu.vector_store %arg3[%104, %c0_28, %c0_29], %107 {strides = array<i32>} : memref<8x8x128xf32, #tpu.memory_space<vmem>>, vector<1x8x128xf32>,
    %c3_i32 = arith.constant 3 : i32
    %108 = arith.index_cast %c3_i32 : i32 to index
    %c0_30 = arith.constant 0 : index
    %c0_31 = arith.constant 0 : index
    %109 = vector.load %arg1[%108, %c0_30, %c0_31] : memref<8x8x512xf32, #tpu.memory_space<vmem>>, vector<1x8x512xf32>
    %110 = vector.shape_cast %109 : vector<1x8x512xf32> to vector<8x512xf32>
    %cst_32 = arith.constant dense<0.000000e+00> : vector<8x512xf32>
    %111 = tpu.matmul %103, %3, %cst_32 {dimension_numbers = #tpu.dot_dimension_numbers<[1], [0], [0], [1], [0, 0, 1, 1], [], []>} : vector<8x128xf32>, vector<128x512xf32>, vector<8x512xf32> -> vector<8x512xf32>
    %112 = arith.addf %110, %111 : vector<8x512xf32>
    %113 = vector.extract_strided_slice %112 {offsets = [0, 0], sizes = [8, 128], strides = [1, 1]} : vector<8x512xf32> to vector<8x128xf32>
    %114 = arith.negf %113 : vector<8x128xf32>
    %115 = math.exp %114 : vector<8x128xf32>
    %cst_33 = arith.constant 1.000000e+00 : f32
    %116 = vector.broadcast %cst_33 : f32 to vector<8x128xf32>
    %117 = arith.addf %116, %115 : vector<8x128xf32>
    %118 = arith.divf %116, %117 : vector<8x128xf32>
    %119 = vector.extract_strided_slice %112 {offsets = [0, 128], sizes = [8, 128], strides = [1, 1]} : vector<8x512xf32> to vector<8x128xf32>
    %120 = arith.negf %119 : vector<8x128xf32>
    %121 = math.exp %120 : vector<8x128xf32>
    %cst_34 = arith.constant 1.000000e+00 : f32
    %122 = vector.broadcast %cst_34 : f32 to vector<8x128xf32>
    %123 = arith.addf %122, %121 : vector<8x128xf32>
    %124 = arith.divf %122, %123 : vector<8x128xf32>
    %125 = vector.extract_strided_slice %112 {offsets = [0, 256], sizes = [8, 128], strides = [1, 1]} : vector<8x512xf32> to vector<8x128xf32>
    %126 = math.tanh %125 : vector<8x128xf32>
    %127 = vector.extract_strided_slice %112 {offsets = [0, 384], sizes = [8, 128], strides = [1, 1]} : vector<8x512xf32> to vector<8x128xf32>
    %128 = arith.negf %127 : vector<8x128xf32>
    %129 = math.exp %128 : vector<8x128xf32>
    %cst_35 = arith.constant 1.000000e+00 : f32
    %130 = vector.broadcast %cst_35 : f32 to vector<8x128xf32>
    %131 = arith.addf %130, %129 : vector<8x128xf32>
    %132 = arith.divf %130, %131 : vector<8x128xf32>
    %133 = arith.mulf %124, %101 : vector<8x128xf32>
    %134 = arith.mulf %118, %126 : vector<8x128xf32>
    %135 = arith.addf %133, %134 : vector<8x128xf32>
    %136 = math.tanh %135 : vector<8x128xf32>
    %137 = arith.mulf %132, %136 : vector<8x128xf32>
    %138 = arith.index_cast %c3_i32 : i32 to index
    %c0_36 = arith.constant 0 : index
    %c0_37 = arith.constant 0 : index
    %139 = vector.load %arg3[%138, %c0_36, %c0_37] : memref<8x8x128xf32, #tpu.memory_space<vmem>>, vector<1x8x128xf32>
    %140 = vector.shape_cast %139 : vector<1x8x128xf32> to vector<8x128xf32>
    %141 = vector.shape_cast %137 : vector<8x128xf32> to vector<1x8x128xf32>
    tpu.vector_store %arg3[%138, %c0_36, %c0_37], %141 {strides = array<i32>} : memref<8x8x128xf32, #tpu.memory_space<vmem>>, vector<1x8x128xf32>,
    %c4_i32 = arith.constant 4 : i32
    %142 = arith.index_cast %c4_i32 : i32 to index
    %c0_38 = arith.constant 0 : index
    %c0_39 = arith.constant 0 : index
    %143 = vector.load %arg1[%142, %c0_38, %c0_39] : memref<8x8x512xf32, #tpu.memory_space<vmem>>, vector<1x8x512xf32>
    %144 = vector.shape_cast %143 : vector<1x8x512xf32> to vector<8x512xf32>
    %cst_40 = arith.constant dense<0.000000e+00> : vector<8x512xf32>
    %145 = tpu.matmul %137, %3, %cst_40 {dimension_numbers = #tpu.dot_dimension_numbers<[1], [0], [0], [1], [0, 0, 1, 1], [], []>} : vector<8x128xf32>, vector<128x512xf32>, vector<8x512xf32> -> vector<8x512xf32>
    %146 = arith.addf %144, %145 : vector<8x512xf32>
    %147 = vector.extract_strided_slice %146 {offsets = [0, 0], sizes = [8, 128], strides = [1, 1]} : vector<8x512xf32> to vector<8x128xf32>
    %148 = arith.negf %147 : vector<8x128xf32>
    %149 = math.exp %148 : vector<8x128xf32>
    %cst_41 = arith.constant 1.000000e+00 : f32
    %150 = vector.broadcast %cst_41 : f32 to vector<8x128xf32>
    %151 = arith.addf %150, %149 : vector<8x128xf32>
    %152 = arith.divf %150, %151 : vector<8x128xf32>
    %153 = vector.extract_strided_slice %146 {offsets = [0, 128], sizes = [8, 128], strides = [1, 1]} : vector<8x512xf32> to vector<8x128xf32>
    %154 = arith.negf %153 : vector<8x128xf32>
    %155 = math.exp %154 : vector<8x128xf32>
    %cst_42 = arith.constant 1.000000e+00 : f32
    %156 = vector.broadcast %cst_42 : f32 to vector<8x128xf32>
    %157 = arith.addf %156, %155 : vector<8x128xf32>
    %158 = arith.divf %156, %157 : vector<8x128xf32>
    %159 = vector.extract_strided_slice %146 {offsets = [0, 256], sizes = [8, 128], strides = [1, 1]} : vector<8x512xf32> to vector<8x128xf32>
    %160 = math.tanh %159 : vector<8x128xf32>
    %161 = vector.extract_strided_slice %146 {offsets = [0, 384], sizes = [8, 128], strides = [1, 1]} : vector<8x512xf32> to vector<8x128xf32>
    %162 = arith.negf %161 : vector<8x128xf32>
    %163 = math.exp %162 : vector<8x128xf32>
    %cst_43 = arith.constant 1.000000e+00 : f32
    %164 = vector.broadcast %cst_43 : f32 to vector<8x128xf32>
    %165 = arith.addf %164, %163 : vector<8x128xf32>
    %166 = arith.divf %164, %165 : vector<8x128xf32>
    %167 = arith.mulf %158, %135 : vector<8x128xf32>
    %168 = arith.mulf %152, %160 : vector<8x128xf32>
    %169 = arith.addf %167, %168 : vector<8x128xf32>
    %170 = math.tanh %169 : vector<8x128xf32>
    %171 = arith.mulf %166, %170 : vector<8x128xf32>
    %172 = arith.index_cast %c4_i32 : i32 to index
    %c0_44 = arith.constant 0 : index
    %c0_45 = arith.constant 0 : index
    %173 = vector.load %arg3[%172, %c0_44, %c0_45] : memref<8x8x128xf32, #tpu.memory_space<vmem>>, vector<1x8x128xf32>
    %174 = vector.shape_cast %173 : vector<1x8x128xf32> to vector<8x128xf32>
    %175 = vector.shape_cast %171 : vector<8x128xf32> to vector<1x8x128xf32>
    tpu.vector_store %arg3[%172, %c0_44, %c0_45], %175 {strides = array<i32>} : memref<8x8x128xf32, #tpu.memory_space<vmem>>, vector<1x8x128xf32>,
    %c5_i32 = arith.constant 5 : i32
    %176 = arith.index_cast %c5_i32 : i32 to index
    %c0_46 = arith.constant 0 : index
    %c0_47 = arith.constant 0 : index
    %177 = vector.load %arg1[%176, %c0_46, %c0_47] : memref<8x8x512xf32, #tpu.memory_space<vmem>>, vector<1x8x512xf32>
    %178 = vector.shape_cast %177 : vector<1x8x512xf32> to vector<8x512xf32>
    %cst_48 = arith.constant dense<0.000000e+00> : vector<8x512xf32>
    %179 = tpu.matmul %171, %3, %cst_48 {dimension_numbers = #tpu.dot_dimension_numbers<[1], [0], [0], [1], [0, 0, 1, 1], [], []>} : vector<8x128xf32>, vector<128x512xf32>, vector<8x512xf32> -> vector<8x512xf32>
    %180 = arith.addf %178, %179 : vector<8x512xf32>
    %181 = vector.extract_strided_slice %180 {offsets = [0, 0], sizes = [8, 128], strides = [1, 1]} : vector<8x512xf32> to vector<8x128xf32>
    %182 = arith.negf %181 : vector<8x128xf32>
    %183 = math.exp %182 : vector<8x128xf32>
    %cst_49 = arith.constant 1.000000e+00 : f32
    %184 = vector.broadcast %cst_49 : f32 to vector<8x128xf32>
    %185 = arith.addf %184, %183 : vector<8x128xf32>
    %186 = arith.divf %184, %185 : vector<8x128xf32>
    %187 = vector.extract_strided_slice %180 {offsets = [0, 128], sizes = [8, 128], strides = [1, 1]} : vector<8x512xf32> to vector<8x128xf32>
    %188 = arith.negf %187 : vector<8x128xf32>
    %189 = math.exp %188 : vector<8x128xf32>
    %cst_50 = arith.constant 1.000000e+00 : f32
    %190 = vector.broadcast %cst_50 : f32 to vector<8x128xf32>
    %191 = arith.addf %190, %189 : vector<8x128xf32>
    %192 = arith.divf %190, %191 : vector<8x128xf32>
    %193 = vector.extract_strided_slice %180 {offsets = [0, 256], sizes = [8, 128], strides = [1, 1]} : vector<8x512xf32> to vector<8x128xf32>
    %194 = math.tanh %193 : vector<8x128xf32>
    %195 = vector.extract_strided_slice %180 {offsets = [0, 384], sizes = [8, 128], strides = [1, 1]} : vector<8x512xf32> to vector<8x128xf32>
    %196 = arith.negf %195 : vector<8x128xf32>
    %197 = math.exp %196 : vector<8x128xf32>
    %cst_51 = arith.constant 1.000000e+00 : f32
    %198 = vector.broadcast %cst_51 : f32 to vector<8x128xf32>
    %199 = arith.addf %198, %197 : vector<8x128xf32>
    %200 = arith.divf %198, %199 : vector<8x128xf32>
    %201 = arith.mulf %192, %169 : vector<8x128xf32>
    %202 = arith.mulf %186, %194 : vector<8x128xf32>
    %203 = arith.addf %201, %202 : vector<8x128xf32>
    %204 = math.tanh %203 : vector<8x128xf32>
    %205 = arith.mulf %200, %204 : vector<8x128xf32>
    %206 = arith.index_cast %c5_i32 : i32 to index
    %c0_52 = arith.constant 0 : index
    %c0_53 = arith.constant 0 : index
    %207 = vector.load %arg3[%206, %c0_52, %c0_53] : memref<8x8x128xf32, #tpu.memory_space<vmem>>, vector<1x8x128xf32>
    %208 = vector.shape_cast %207 : vector<1x8x128xf32> to vector<8x128xf32>
    %209 = vector.shape_cast %205 : vector<8x128xf32> to vector<1x8x128xf32>
    tpu.vector_store %arg3[%206, %c0_52, %c0_53], %209 {strides = array<i32>} : memref<8x8x128xf32, #tpu.memory_space<vmem>>, vector<1x8x128xf32>,
    %c6_i32 = arith.constant 6 : i32
    %210 = arith.index_cast %c6_i32 : i32 to index
    %c0_54 = arith.constant 0 : index
    %c0_55 = arith.constant 0 : index
    %211 = vector.load %arg1[%210, %c0_54, %c0_55] : memref<8x8x512xf32, #tpu.memory_space<vmem>>, vector<1x8x512xf32>
    %212 = vector.shape_cast %211 : vector<1x8x512xf32> to vector<8x512xf32>
    %cst_56 = arith.constant dense<0.000000e+00> : vector<8x512xf32>
    %213 = tpu.matmul %205, %3, %cst_56 {dimension_numbers = #tpu.dot_dimension_numbers<[1], [0], [0], [1], [0, 0, 1, 1], [], []>} : vector<8x128xf32>, vector<128x512xf32>, vector<8x512xf32> -> vector<8x512xf32>
    %214 = arith.addf %212, %213 : vector<8x512xf32>
    %215 = vector.extract_strided_slice %214 {offsets = [0, 0], sizes = [8, 128], strides = [1, 1]} : vector<8x512xf32> to vector<8x128xf32>
    %216 = arith.negf %215 : vector<8x128xf32>
    %217 = math.exp %216 : vector<8x128xf32>
    %cst_57 = arith.constant 1.000000e+00 : f32
    %218 = vector.broadcast %cst_57 : f32 to vector<8x128xf32>
    %219 = arith.addf %218, %217 : vector<8x128xf32>
    %220 = arith.divf %218, %219 : vector<8x128xf32>
    %221 = vector.extract_strided_slice %214 {offsets = [0, 128], sizes = [8, 128], strides = [1, 1]} : vector<8x512xf32> to vector<8x128xf32>
    %222 = arith.negf %221 : vector<8x128xf32>
    %223 = math.exp %222 : vector<8x128xf32>
    %cst_58 = arith.constant 1.000000e+00 : f32
    %224 = vector.broadcast %cst_58 : f32 to vector<8x128xf32>
    %225 = arith.addf %224, %223 : vector<8x128xf32>
    %226 = arith.divf %224, %225 : vector<8x128xf32>
    %227 = vector.extract_strided_slice %214 {offsets = [0, 256], sizes = [8, 128], strides = [1, 1]} : vector<8x512xf32> to vector<8x128xf32>
    %228 = math.tanh %227 : vector<8x128xf32>
    %229 = vector.extract_strided_slice %214 {offsets = [0, 384], sizes = [8, 128], strides = [1, 1]} : vector<8x512xf32> to vector<8x128xf32>
    %230 = arith.negf %229 : vector<8x128xf32>
    %231 = math.exp %230 : vector<8x128xf32>
    %cst_59 = arith.constant 1.000000e+00 : f32
    %232 = vector.broadcast %cst_59 : f32 to vector<8x128xf32>
    %233 = arith.addf %232, %231 : vector<8x128xf32>
    %234 = arith.divf %232, %233 : vector<8x128xf32>
    %235 = arith.mulf %226, %203 : vector<8x128xf32>
    %236 = arith.mulf %220, %228 : vector<8x128xf32>
    %237 = arith.addf %235, %236 : vector<8x128xf32>
    %238 = math.tanh %237 : vector<8x128xf32>
    %239 = arith.mulf %234, %238 : vector<8x128xf32>
    %240 = arith.index_cast %c6_i32 : i32 to index
    %c0_60 = arith.constant 0 : index
    %c0_61 = arith.constant 0 : index
    %241 = vector.load %arg3[%240, %c0_60, %c0_61] : memref<8x8x128xf32, #tpu.memory_space<vmem>>, vector<1x8x128xf32>
    %242 = vector.shape_cast %241 : vector<1x8x128xf32> to vector<8x128xf32>
    %243 = vector.shape_cast %239 : vector<8x128xf32> to vector<1x8x128xf32>
    tpu.vector_store %arg3[%240, %c0_60, %c0_61], %243 {strides = array<i32>} : memref<8x8x128xf32, #tpu.memory_space<vmem>>, vector<1x8x128xf32>,
    %c7_i32 = arith.constant 7 : i32
    %244 = arith.index_cast %c7_i32 : i32 to index
    %c0_62 = arith.constant 0 : index
    %c0_63 = arith.constant 0 : index
    %245 = vector.load %arg1[%244, %c0_62, %c0_63] : memref<8x8x512xf32, #tpu.memory_space<vmem>>, vector<1x8x512xf32>
    %246 = vector.shape_cast %245 : vector<1x8x512xf32> to vector<8x512xf32>
    %cst_64 = arith.constant dense<0.000000e+00> : vector<8x512xf32>
    %247 = tpu.matmul %239, %3, %cst_64 {dimension_numbers = #tpu.dot_dimension_numbers<[1], [0], [0], [1], [0, 0, 1, 1], [], []>} : vector<8x128xf32>, vector<128x512xf32>, vector<8x512xf32> -> vector<8x512xf32>
    %248 = arith.addf %246, %247 : vector<8x512xf32>
    %249 = vector.extract_strided_slice %248 {offsets = [0, 0], sizes = [8, 128], strides = [1, 1]} : vector<8x512xf32> to vector<8x128xf32>
    %250 = arith.negf %249 : vector<8x128xf32>
    %251 = math.exp %250 : vector<8x128xf32>
    %cst_65 = arith.constant 1.000000e+00 : f32
    %252 = vector.broadcast %cst_65 : f32 to vector<8x128xf32>
    %253 = arith.addf %252, %251 : vector<8x128xf32>
    %254 = arith.divf %252, %253 : vector<8x128xf32>
    %255 = vector.extract_strided_slice %248 {offsets = [0, 128], sizes = [8, 128], strides = [1, 1]} : vector<8x512xf32> to vector<8x128xf32>
    %256 = arith.negf %255 : vector<8x128xf32>
    %257 = math.exp %256 : vector<8x128xf32>
    %cst_66 = arith.constant 1.000000e+00 : f32
    %258 = vector.broadcast %cst_66 : f32 to vector<8x128xf32>
    %259 = arith.addf %258, %257 : vector<8x128xf32>
    %260 = arith.divf %258, %259 : vector<8x128xf32>
    %261 = vector.extract_strided_slice %248 {offsets = [0, 256], sizes = [8, 128], strides = [1, 1]} : vector<8x512xf32> to vector<8x128xf32>
    %262 = math.tanh %261 : vector<8x128xf32>
    %263 = vector.extract_strided_slice %248 {offsets = [0, 384], sizes = [8, 128], strides = [1, 1]} : vector<8x512xf32> to vector<8x128xf32>
    %264 = arith.negf %263 : vector<8x128xf32>
    %265 = math.exp %264 : vector<8x128xf32>
    %cst_67 = arith.constant 1.000000e+00 : f32
    %266 = vector.broadcast %cst_67 : f32 to vector<8x128xf32>
    %267 = arith.addf %266, %265 : vector<8x128xf32>
    %268 = arith.divf %266, %267 : vector<8x128xf32>
    %269 = arith.mulf %260, %237 : vector<8x128xf32>
    %270 = arith.mulf %254, %262 : vector<8x128xf32>
    %271 = arith.addf %269, %270 : vector<8x128xf32>
    %272 = math.tanh %271 : vector<8x128xf32>
    %273 = arith.mulf %268, %272 : vector<8x128xf32>
    %274 = arith.index_cast %c7_i32 : i32 to index
    %c0_68 = arith.constant 0 : index
    %c0_69 = arith.constant 0 : index
    %275 = vector.load %arg3[%274, %c0_68, %c0_69] : memref<8x8x128xf32, #tpu.memory_space<vmem>>, vector<1x8x128xf32>
    %276 = vector.shape_cast %275 : vector<1x8x128xf32> to vector<8x128xf32>
    %277 = vector.shape_cast %273 : vector<8x128xf32> to vector<1x8x128xf32>
    tpu.vector_store %arg3[%274, %c0_68, %c0_69], %277 {strides = array<i32>} : memref<8x8x128xf32, #tpu.memory_space<vmem>>, vector<1x8x128xf32>,
    %c8_i32 = arith.constant 8 : i32
    %c0_70 = arith.constant 0 : index
    %c0_71 = arith.constant 0 : index
    %278 = vector.load %arg4[%c0_70, %c0_71] : memref<8x128xf32, #tpu.memory_space<vmem>>, vector<8x128xf32>
    tpu.vector_store %arg4[%c0_70, %c0_71], %273 {strides = array<i32>} : memref<8x128xf32, #tpu.memory_space<vmem>>, vector<8x128xf32>,
    %c0_72 = arith.constant 0 : index
    %c0_73 = arith.constant 0 : index
    %279 = vector.load %arg5[%c0_72, %c0_73] : memref<8x128xf32, #tpu.memory_space<vmem>>, vector<8x128xf32>
    tpu.vector_store %arg5[%c0_72, %c0_73], %271 {strides = array<i32>} : memref<8x128xf32, #tpu.memory_space<vmem>>, vector<8x128xf32>,
    return
  }
  func.func @transform_0(%arg0: i32) -> (i32, i32, i32) {
    %c0_i32 = arith.constant 0 : i32
    %c0_i32_0 = arith.constant 0 : i32
    %c0_i32_1 = arith.constant 0 : i32
    return %arg0, %c0_i32, %c0_i32_0 : i32, i32, i32
  }
  func.func @transform_1(%arg0: i32) -> (i32, i32) {
    %c0_i32 = arith.constant 0 : i32
    %c0_i32_0 = arith.constant 0 : i32
    %c0_i32_1 = arith.constant 0 : i32
    return %c0_i32, %c0_i32_0 : i32, i32
  }
  func.func @transform_2(%arg0: i32) -> (i32, i32, i32) {
    %c0_i32 = arith.constant 0 : i32
    %c0_i32_0 = arith.constant 0 : i32
    %c0_i32_1 = arith.constant 0 : i32
    return %arg0, %c0_i32, %c0_i32_0 : i32, i32, i32
  }
}

module attributes {stable_mosaic.version = 11 : i64} {
  func.func @_linear_kernel(%arg0: i32, %arg1: i32, %arg2: memref<64x128xf32, #tpu.memory_space<vmem>>, %arg3: memref<128x128xf32, #tpu.memory_space<vmem>>, %arg4: memref<1x128xf32, #tpu.memory_space<vmem>>, %arg5: memref<64x128xf32, #tpu.memory_space<vmem>>) attributes {dimension_semantics = [#tpu.dimension_semantics<parallel>, #tpu.dimension_semantics<parallel>], iteration_bounds = array<i64: 1, 1>, scalar_prefetch = 0 : i64, scratch_operands = 0 : i64, tpu.core_type = #tpu.core_type<tc>, window_params = [{transform_indices = @transform_0, window_bounds = array<i64: 64, 128>}, {transform_indices = @transform_1, window_bounds = array<i64: 128, 128>}, {transform_indices = @transform_2, window_bounds = array<i64: 1, 128>}, {transform_indices = @transform_3, window_bounds = array<i64: 64, 128>}]} {
    %c0 = arith.constant 0 : index
    %c0_0 = arith.constant 0 : index
    %0 = vector.load %arg2[%c0, %c0_0] : memref<64x128xf32, #tpu.memory_space<vmem>>, vector<64x128xf32>
    %c0_1 = arith.constant 0 : index
    %c0_2 = arith.constant 0 : index
    %1 = vector.load %arg3[%c0_1, %c0_2] : memref<128x128xf32, #tpu.memory_space<vmem>>, vector<128x128xf32>
    %cst = arith.constant dense<0.000000e+00> : vector<64x128xf32>
    %2 = tpu.matmul %0, %1, %cst {dimension_numbers = #tpu.dot_dimension_numbers<[1], [0], [0], [1], [0, 0, 1, 1], [], []>} : vector<64x128xf32>, vector<128x128xf32>, vector<64x128xf32> -> vector<64x128xf32>
    %c0_3 = arith.constant 0 : index
    %c0_4 = arith.constant 0 : index
    %3 = vector.load %arg4[%c0_3, %c0_4] : memref<1x128xf32, #tpu.memory_space<vmem>>, vector<1x128xf32>
    %4 = vector.broadcast %3 : vector<1x128xf32> to vector<64x128xf32>
    %5 = arith.addf %2, %4 : vector<64x128xf32>
    %c0_5 = arith.constant 0 : index
    %c0_6 = arith.constant 0 : index
    %6 = vector.load %arg5[%c0_5, %c0_6] : memref<64x128xf32, #tpu.memory_space<vmem>>, vector<64x128xf32>
    tpu.vector_store %arg5[%c0_5, %c0_6], %5 {strides = array<i32>} : memref<64x128xf32, #tpu.memory_space<vmem>>, vector<64x128xf32>,
    return
  }
  func.func @transform_0(%arg0: i32, %arg1: i32) -> (i32, i32) {
    %c0_i32 = arith.constant 0 : i32
    %c0_i32_0 = arith.constant 0 : i32
    return %arg0, %c0_i32 : i32, i32
  }
  func.func @transform_1(%arg0: i32, %arg1: i32) -> (i32, i32) {
    %c0_i32 = arith.constant 0 : i32
    %c0_i32_0 = arith.constant 0 : i32
    return %c0_i32, %arg1 : i32, i32
  }
  func.func @transform_2(%arg0: i32, %arg1: i32) -> (i32, i32) {
    %c0_i32 = arith.constant 0 : i32
    %c0_i32_0 = arith.constant 0 : i32
    return %c0_i32, %arg1 : i32, i32
  }
  func.func @transform_3(%arg0: i32, %arg1: i32) -> (i32, i32) {
    %c0_i32 = arith.constant 0 : i32
    return %arg0, %arg1 : i32, i32
  }
}

</mosaic_0001>

<bundles_post_ra>
// kernel: name_classifier_forward.3
= control target key start
LH: loop header
LB: loop body
LE: loop exit
PB: predicated region body
PF: predicated region fallthrough
CT: control target
= control target key end

     0   :  { %v248_v3 = vmov 0.0   ;;  %vm54_vm0 = vcmask 261120   ;;  %v34_v27 = vlaneseq  ;;  %s350_s1 = inlined_call_operand.vmem [shape: f32[32,512], index: 1, kind: input, shape index: {}]   ;;  %s351_s0 = inlined_call_operand.vmem [shape: f32[16,32], index: 0, kind: input, shape index: {}]   ;;  %s352_s2 = inlined_call_operand.vmem [shape: f32[1,512], index: 2, kind: input, shape index: {}]   ;;  %s353_s3 = inlined_call_operand.vmem [shape: f32[16,512], index: 3, kind: output, shape index: {}]  }
   0x1   :  { %v17_v0 = vld [vmem:[%s350_s1 + $0x8] sm:$0xff]  ;;  %v19_v2 = vld [vmem:[%s350_s1 + $0x18] sm:$0xff]  ;;  %125 = vmatprep.mubr.f32.mxu0 %v248_v3  ;;  %202 = vmatprep.mubr.f32.mxu1 %v248_v3  ;;  %v16_v6 = vld [vmem:[%s350_s1] sm:$0xff] }
   0x2   :  { %v21_v1 = vld [vmem:[%s350_s1 + $0x28] sm:$0xff]  ;;  %v23_v5 = vld [vmem:[%s350_s1 + $0x38] sm:$0xff]  ;;  %v20_v7 = vld [vmem:[%s350_s1 + $0x20] sm:$0xff]  ;;  %v35_v28 = vshrl.u32 %v34_v27, 7 }
   0x3   :  { %v231_v4 = vpack.c.bf16 %v21_v1, %v17_v0  ;;  %v239_v8 = vpack.c.bf16 %v23_v5, %v19_v2  ;;  %v233_v9 = vpack.c.bf16 %v20_v7, %v16_v6  ;;  %v18_v10 = vld [vmem:[%s350_s1 + $0x10] sm:$0xff]  ;;  %v25_v12 = vld [vmem:[%s350_s1 + $0x48] sm:$0xff]  ;;  %v27_v15 = vld [vmem:[%s350_s1 + $0x58] sm:$0xff] }
   0x4   :  { %v22_v11 = vld [vmem:[%s350_s1 + $0x30] sm:$0xff]  ;;  %v29_v14 = vld [vmem:[%s350_s1 + $0x68] sm:$0xff]  ;;  %v31_v16 = vld [vmem:[%s350_s1 + $0x78] sm:$0xff]  ;;  %v36_v29 = vsub.s32 0, %v35_v28  ;;  %v44_v31 = vsub.s32 2, %v35_v28  ;;  %v40_v32 = vsub.s32 1, %v35_v28 }
   0x5   :  { %232 = vmatprep.subr.bf16.mxu0 %v231_v4  ;;  %v241_v13 = vpack.c.bf16 %v22_v11, %v18_v10  ;;  %240 = vmatprep.subr.bf16.mxu1 %v239_v8  ;;  %v235_v17 = vpack.c.bf16 %v29_v14, %v25_v12  ;;  %v243_v18 = vpack.c.bf16 %v31_v16, %v27_v15  ;;  %v24_v19 = vld [vmem:[%s350_s1 + $0x40] sm:$0xff]  ;;  %v26_v21 = vld [vmem:[%s350_s1 + $0x50] sm:$0xff]  ;;  %v15_v26 = vld [vmem:[%s351_s0 + $0x8] sm:$0xff]  ;;  %v48_v33 = vsub.s32 3, %v35_v28 }
   0x6   :  { %234 = vmatpush1.bf16.msra.mxu0 %v233_v9  ;;  %v28_v20 = vld [vmem:[%s350_s1 + $0x60] sm:$0xff]  ;;  %v30_v23 = vld [vmem:[%s350_s1 + $0x70] sm:$0xff] }
   0x7   :  { %242 = vmatpush1.bf16.msra.mxu1 %v241_v13  ;;  %v237_v22 = vpack.c.bf16 %v28_v20, %v24_v19  ;;  %236 = vmatprep.subr.bf16.mxu0 %v235_v17  ;;  %v245_v24 = vpack.c.bf16 %v30_v23, %v26_v21  ;;  %v14_v25 = vld [vmem:[%s351_s0] sm:$0xff] }
   0x8   :  { %244 = vmatprep.subr.bf16.mxu1 %v243_v18  ;;  %v32_v30 = vld [vmem:[%s352_s2] sm:$0xf] }
   0x9   :  { %v37_v34 = vrot.slane %v32_v30, %v36_v29  ;;  %v45_v35 = vrot.slane %v32_v30, %v44_v31  ;;  %v41_v36 = vrot.slane %v32_v30, %v40_v32  ;;  %v49_v37 = vrot.slane %v32_v30, %v48_v33 }
   0xa   :  { %238 = vmatpush1.bf16.msra.mxu0 %v237_v22 }
   0xb   :  { %246 = vmatpush1.bf16.msra.mxu1 %v245_v24 }
   0xd   :  { %227 = vmatmul.mubr.msk.f32.vlgmr.msra.gmra.mrb[0].mxu0 %vm54_vm0, %v14_v25 }
   0xe   :  { %229 = vmatmul.mubr.msk.f32.vlgmr.msra.gmra.mrb[0].mxu1 %vm54_vm0, %v14_v25  ;;  %131 = vmatprep.mubr.f32.mxu0 %v248_v3 }
   0xf   :  { %208 = vmatprep.mubr.f32.mxu1 %v248_v3 }
  0x11   :  { %228 = vmatmul.mubr.msk.f32.gmra.mrb[2].mxu0 %vm54_vm0, %v15_v26 }
  0x12   :  { %230 = vmatmul.mubr.msk.f32.gmra.mrb[2].mxu1 %vm54_vm0, %v15_v26 }
  0xe0   :  { %v127_v38 = vpop.f32.mrb[0].mxu0 }
  0xe1   :  { %v128_v39 = vadd.f32 %v127_v38, %v37_v34  ;;  %v204_v40 = vpop.f32.mrb[0].mxu1  ;;  %v129_v41 = vpop.f32.mrb[1].mxu0 }
  0xe2   :  { %v205_v42 = vadd.f32 %v204_v40, %v45_v35  ;;  %v130_v43 = vadd.f32 %v129_v41, %v41_v36  ;;  %v206_v44 = vpop.f32.mrb[1].mxu1 }
  0xe3   :  { %215 = vst [vmem:[%s353_s3] sm:$0xff] %v128_v39  ;;  %v207_v45 = vadd.f32 %v206_v44, %v49_v37 }
  0xe4   :  { %217 = vst [vmem:[%s353_s3 + $0x10] sm:$0xff] %v205_v42  ;;  %216 = vst [vmem:[%s353_s3 + $0x8] sm:$0xff] %v130_v43  ;;  %v133_v46 = vpop.f32.mrb[2].mxu0 }
  0xe5   :  { %218 = vst [vmem:[%s353_s3 + $0x18] sm:$0xff] %v207_v45  ;;  %v134_v47 = vadd.f32 %v133_v46, %v37_v34  ;;  %v210_v48 = vpop.f32.mrb[2].mxu1  ;;  %v135_v49 = vpop.f32.mrb[3].mxu0 }
  0xe6   :  { %v211_v50 = vadd.f32 %v210_v48, %v45_v35  ;;  %v136_v51 = vadd.f32 %v135_v49, %v41_v36  ;;  %v212_v52 = vpop.f32.mrb[3].mxu1 }
  0xe7   :  { %219 = vst [vmem:[%s353_s3 + $0x20] sm:$0xff] %v134_v47  ;;  %v213_v53 = vadd.f32 %v212_v52, %v49_v37 }
  0xe8   :  { %221 = vst [vmem:[%s353_s3 + $0x30] sm:$0xff] %v211_v50  ;;  %220 = vst [vmem:[%s353_s3 + $0x28] sm:$0xff] %v136_v51 }
  0xe9   :  { %222 = vst [vmem:[%s353_s3 + $0x38] sm:$0xff] %v213_v53 }

// kernel: name_classifier_forward.5
= control target key start
LH: loop header
LB: loop body
LE: loop exit
PB: predicated region body
PF: predicated region fallthrough
CT: control target
= control target key end

     0   :  { %s398_s1 = inlined_call_operand.vmem [shape: f32[128,128], index: 1, kind: input, shape index: {}]   ;;  %s399_s0 = inlined_call_operand.vmem [shape: f32[64,128], index: 0, kind: input, shape index: {}]   ;;  %s400_s2 = inlined_call_operand.vmem [shape: f32[1,128], index: 2, kind: input, shape index: {}]   ;;  %s401_s3 = inlined_call_operand.vmem [shape: f32[64,128], index: 3, kind: output, shape index: {}]  }
   0x1   :  { %v22_v0 = vld [vmem:[%s398_s1] sm:$0xff]  ;;  %v23_v1 = vld [vmem:[%s398_s1 + $0x8] sm:$0xff]  ;;  %v24_v2 = vld [vmem:[%s398_s1 + $0x10] sm:$0xff] }
   0x2   :  { %v231_v3 = vpack.c.bf16 %v23_v1, %v22_v0  ;;  %v25_v4 = vld [vmem:[%s398_s1 + $0x18] sm:$0xff]  ;;  %v26_v6 = vld [vmem:[%s398_s1 + $0x20] sm:$0xff]  ;;  %v27_v7 = vld [vmem:[%s398_s1 + $0x28] sm:$0xff] }
   0x3   :  { %v235_v5 = vpack.c.bf16 %v25_v4, %v24_v2  ;;  %v239_v8 = vpack.c.bf16 %v27_v7, %v26_v6  ;;  %v14_v9 = vld [vmem:[%s399_s0] sm:$0xff]  ;;  %v28_v11 = vld [vmem:[%s398_s1 + $0x30] sm:$0xff]  ;;  %v29_v12 = vld [vmem:[%s398_s1 + $0x38] sm:$0xff] }
   0x4   :  { %232 = vmatprep.subr.bf16.mxu0 %v231_v3  ;;  %263 = vmatprep.subr.bf16.mxu1 %v231_v3  ;;  %v18_v10 = vld [vmem:[%s399_s0 + $0x20] sm:$0xff]  ;;  %v243_v13 = vpack.c.bf16 %v29_v12, %v28_v11  ;;  %v31_v15 = vld [vmem:[%s398_s1 + $0x48] sm:$0xff]  ;;  %v32_v17 = vld [vmem:[%s398_s1 + $0x50] sm:$0xff] }
   0x5   :  { %234 = vmatpush3.bf16.msra.mxu0 %v231_v3  ;;  %271 = vmatpush3.bf16.msra.mxu1 %v231_v3  ;;  %v30_v14 = vld [vmem:[%s398_s1 + $0x40] sm:$0xff]  ;;  %v33_v18 = vld [vmem:[%s398_s1 + $0x58] sm:$0xff]  ;;  %v35_v21 = vld [vmem:[%s398_s1 + $0x68] sm:$0xff] }
   0x6   :  { %236 = vmatprep.subr.bf16.mxu0 %v235_v5  ;;  %264 = vmatprep.subr.bf16.mxu1 %v235_v5  ;;  %v247_v16 = vpack.c.bf16 %v31_v15, %v30_v14  ;;  %v251_v19 = vpack.c.bf16 %v33_v18, %v32_v17  ;;  %v34_v20 = vld [vmem:[%s398_s1 + $0x60] sm:$0xff]  ;;  %v36_v23 = vld [vmem:[%s398_s1 + $0x70] sm:$0xff]  ;;  %v37_v24 = vld [vmem:[%s398_s1 + $0x78] sm:$0xff] }
   0x7   :  { %219 = vmatprep.mubr.f32.mxu0 %v14_v9  ;;  %225 = vmatprep.mubr.f32.mxu1 %v18_v10  ;;  %v255_v22 = vpack.c.bf16 %v35_v21, %v34_v20  ;;  %v259_v25 = vpack.c.bf16 %v37_v24, %v36_v23  ;;  %v15_v26 = vld [vmem:[%s399_s0 + $0x8] sm:$0xff]  ;;  %v16_v28 = vld [vmem:[%s399_s0 + $0x10] sm:$0xff]  ;;  %v17_v30 = vld [vmem:[%s399_s0 + $0x18] sm:$0xff] }
   0x8   :  { %v19_v27 = vld [vmem:[%s399_s0 + $0x28] sm:$0xff]  ;;  %v20_v29 = vld [vmem:[%s399_s0 + $0x30] sm:$0xff]  ;;  %v21_v31 = vld [vmem:[%s399_s0 + $0x38] sm:$0xff] }
   0x9   :  { %238 = vmatpush3.bf16.msra.mxu0 %v235_v5  ;;  %272 = vmatpush3.bf16.msra.mxu1 %v235_v5  ;;  %v162_v32 = vld [vmem:[%s400_s2] ss:$0 sm:$0xff] }
   0xa   :  { %240 = vmatprep.subr.bf16.mxu0 %v239_v8  ;;  %265 = vmatprep.subr.bf16.mxu1 %v239_v8 }
   0xd   :  { %242 = vmatpush3.bf16.msra.mxu0 %v239_v8  ;;  %273 = vmatpush3.bf16.msra.mxu1 %v239_v8 }
   0xe   :  { %244 = vmatprep.subr.bf16.mxu0 %v243_v13  ;;  %266 = vmatprep.subr.bf16.mxu1 %v243_v13 }
  0x11   :  { %246 = vmatpush3.bf16.msra.mxu0 %v243_v13  ;;  %274 = vmatpush3.bf16.msra.mxu1 %v243_v13 }
  0x12   :  { %248 = vmatprep.subr.bf16.mxu0 %v247_v16  ;;  %267 = vmatprep.subr.bf16.mxu1 %v247_v16 }
  0x15   :  { %250 = vmatpush3.bf16.msra.mxu0 %v247_v16  ;;  %275 = vmatpush3.bf16.msra.mxu1 %v247_v16 }
  0x16   :  { %252 = vmatprep.subr.bf16.mxu0 %v251_v19  ;;  %268 = vmatprep.subr.bf16.mxu1 %v251_v19 }
  0x19   :  { %254 = vmatpush3.bf16.msra.mxu0 %v251_v19  ;;  %276 = vmatpush3.bf16.msra.mxu1 %v251_v19 }
  0x1a   :  { %256 = vmatprep.subr.bf16.mxu0 %v255_v22  ;;  %269 = vmatprep.subr.bf16.mxu1 %v255_v22 }
  0x1d   :  { %258 = vmatpush3.bf16.msra.mxu0 %v255_v22  ;;  %277 = vmatpush3.bf16.msra.mxu1 %v255_v22 }
  0x1e   :  { %260 = vmatprep.subr.bf16.mxu0 %v259_v25  ;;  %270 = vmatprep.subr.bf16.mxu1 %v259_v25 }
  0x21   :  { %262 = vmatpush3.bf16.msra.mxu0 %v259_v25  ;;  %278 = vmatpush3.bf16.msra.mxu1 %v259_v25 }
  0x24   :  { %220 = vmatmul.mubr.f32.vlgmr.msra.gmra.mrb[0].mxu0 %v15_v26  ;;  %226 = vmatmul.mubr.f32.vlgmr.msra.gmra.mrb[0].mxu1 %v19_v27 }
  0x25   :  { %222 = vmatprep.mubr.f32.mxu0 %v16_v28  ;;  %228 = vmatprep.mubr.f32.mxu1 %v20_v29 }
  0x28   :  { %223 = vmatmul.mubr.f32.gmra.mrb[2].mxu0 %v17_v30  ;;  %229 = vmatmul.mubr.f32.gmra.mrb[2].mxu1 %v21_v31 }
  0xf7   :  { %v221_v33 = vpop.f32.mrb[0].mxu0  ;;  %v227_v34 = vpop.f32.mrb[0].mxu1 }
  0xf8   :  { %v117_v35 = vadd.f32 %v221_v33, %v162_v32  ;;  %v137_v36 = vadd.f32 %v227_v34, %v162_v32  ;;  %v111_v37 = vpop.f32.mrb[1].mxu0  ;;  %v131_v38 = vpop.f32.mrb[1].mxu1 }
  0xf9   :  { %v112_v39 = vadd.f32 %v162_v32, %v111_v37  ;;  %v132_v40 = vadd.f32 %v162_v32, %v131_v38 }
  0xfa   :  { %151 = vst [vmem:[%s401_s3 + $0x8] sm:$0xff] %v117_v35  ;;  %155 = vst [vmem:[%s401_s3 + $0x28] sm:$0xff] %v137_v36 }
  0xfb   :  { %150 = vst [vmem:[%s401_s3] sm:$0xff] %v112_v39  ;;  %154 = vst [vmem:[%s401_s3 + $0x20] sm:$0xff] %v132_v40  ;;  %v224_v41 = vpop.f32.mrb[2].mxu0  ;;  %v230_v42 = vpop.f32.mrb[2].mxu1 }
  0xfc   :  { %v127_v43 = vadd.f32 %v224_v41, %v162_v32  ;;  %v147_v44 = vadd.f32 %v230_v42, %v162_v32  ;;  %v121_v45 = vpop.f32.mrb[3].mxu0  ;;  %v141_v46 = vpop.f32.mrb[3].mxu1 }
  0xfd   :  { %v122_v47 = vadd.f32 %v162_v32, %v121_v45  ;;  %v142_v48 = vadd.f32 %v162_v32, %v141_v46 }
  0xfe   :  { %153 = vst [vmem:[%s401_s3 + $0x18] sm:$0xff] %v127_v43  ;;  %157 = vst [vmem:[%s401_s3 + $0x38] sm:$0xff] %v147_v44 }
  0xff   :  { %152 = vst [vmem:[%s401_s3 + $0x10] sm:$0xff] %v122_v47  ;;  %156 = vst [vmem:[%s401_s3 + $0x30] sm:$0xff] %v142_v48 }

// kernel: name_classifier_forward.4
= control target key start
LH: loop header
LB: loop body
LE: loop exit
PB: predicated region body
PF: predicated region fallthrough
CT: control target
= control target key end

     0   :  { %v2203_v3 = vmov 0.0   ;;  %s2893_s1 = inlined_call_operand.vmem [shape: f32[128,512], index: 1, kind: input, shape index: {}]   ;;  %s2894_s0 = inlined_call_operand.vmem [shape: f32[8,8,512], index: 0, kind: input, shape index: {}]   ;;  %s2895_s2 = inlined_call_operand.vmem [shape: f32[8,8,128], index: 2, kind: output, shape index: {}]  }
   0x1   :  { %v18_v0 = vld [vmem:[%s2893_s1 + $0x8] sm:$0xff]  ;;  %v17_v2 = vld [vmem:[%s2893_s1] sm:$0xff]  ;;  %151 = vmatprep.mubr.f32.mxu0 %v2203_v3  ;;  %222 = vmatprep.mubr.f32.mxu1 %v2203_v3  ;;  %v20_v19 = vld [vmem:[%s2893_s1 + $0x18] sm:$0xff] }
   0x2   :  { %v22_v1 = vld [vmem:[%s2893_s1 + $0x28] sm:$0xff]  ;;  %v21_v5 = vld [vmem:[%s2893_s1 + $0x20] sm:$0xff]  ;;  %v24_v20 = vld [vmem:[%s2893_s1 + $0x38] sm:$0xff] }
   0x3   :  { %v2230_v4 = vpack.c.bf16 %v22_v1, %v18_v0  ;;  %v26_v6 = vld [vmem:[%s2893_s1 + $0x48] sm:$0xff]  ;;  %v2241_v8 = vpack.c.bf16 %v21_v5, %v17_v2  ;;  %v25_v10 = vld [vmem:[%s2893_s1 + $0x40] sm:$0xff]  ;;  %v2282_v22 = vpack.c.bf16 %v24_v20, %v20_v19  ;;  %v19_v23 = vld [vmem:[%s2893_s1 + $0x10] sm:$0xff] }
   0x4   :  { %v30_v7 = vld [vmem:[%s2893_s1 + $0x68] sm:$0xff]  ;;  %v29_v11 = vld [vmem:[%s2893_s1 + $0x60] sm:$0xff]  ;;  %v23_v24 = vld [vmem:[%s2893_s1 + $0x30] sm:$0xff] }
   0x5   :  { %v2243_v9 = vpack.c.bf16 %v30_v7, %v26_v6  ;;  %v34_v12 = vld [vmem:[%s2893_s1 + $0x88] sm:$0xff]  ;;  %1563 = vmatprep.subr.bf16.mxu0 %v2230_v4  ;;  %v2259_v14 = vpack.c.bf16 %v29_v11, %v25_v10  ;;  %v33_v15 = vld [vmem:[%s2893_s1 + $0x80] sm:$0xff]  ;;  %v2290_v25 = vpack.c.bf16 %v23_v24, %v19_v23  ;;  %1595 = vmatprep.subr.bf16.mxu1 %v2282_v22  ;;  %v28_v27 = vld [vmem:[%s2893_s1 + $0x58] sm:$0xff] }
   0x6   :  { %v38_v13 = vld [vmem:[%s2893_s1 + $0xa8] sm:$0xff]  ;;  %1565 = vmatpush1.bf16.msra.mxu0 %v2241_v8  ;;  %v37_v16 = vld [vmem:[%s2893_s1 + $0xa0] sm:$0xff]  ;;  %v32_v28 = vld [vmem:[%s2893_s1 + $0x78] sm:$0xff] }
   0x7   :  { %1567 = vmatprep.subr.bf16.mxu0 %v2243_v9  ;;  %v2268_v17 = vpack.c.bf16 %v38_v13, %v34_v12  ;;  %v42_v18 = vld [vmem:[%s2893_s1 + $0xc8] sm:$0xff]  ;;  %v2293_v26 = vpack.c.bf16 %v37_v16, %v33_v15  ;;  %v27_v29 = vld [vmem:[%s2893_s1 + $0x50] sm:$0xff]  ;;  %v41_v31 = vld [vmem:[%s2893_s1 + $0xc0] sm:$0xff]  ;;  %1597 = vmatpush1.bf16.msra.mxu1 %v2290_v25  ;;  %v2315_v33 = vpack.c.bf16 %v32_v28, %v28_v27 }
   0x8   :  { %v46_v21 = vld [vmem:[%s2893_s1 + $0xe8] sm:$0xff]  ;;  %v45_v32 = vld [vmem:[%s2893_s1 + $0xe0] sm:$0xff]  ;;  %v31_v34 = vld [vmem:[%s2893_s1 + $0x70] sm:$0xff] }
   0x9   :  { %v2306_v30 = vpack.c.bf16 %v46_v21, %v42_v18  ;;  %v50_v35 = vld [vmem:[%s2893_s1 + $0x108] sm:$0xff]  ;;  %v2326_v37 = vpack.c.bf16 %v31_v34, %v27_v29  ;;  %v36_v38 = vld [vmem:[%s2893_s1 + $0x98] sm:$0xff]  ;;  %1599 = vmatprep.subr.bf16.mxu1 %v2315_v33  ;;  %v35_v40 = vld [vmem:[%s2893_s1 + $0x90] sm:$0xff]  ;;  %v2342_v42 = vpack.c.bf16 %v45_v32, %v41_v31 }
   0xa   :  { %1569 = vmatpush1.bf16.msra.mxu0 %v2259_v14  ;;  %v54_v36 = vld [vmem:[%s2893_s1 + $0x128] sm:$0xff]  ;;  %v40_v39 = vld [vmem:[%s2893_s1 + $0xb8] sm:$0xff]  ;;  %v39_v41 = vld [vmem:[%s2893_s1 + $0xb0] sm:$0xff] }
   0xb   :  { %1571 = vmatprep.subr.bf16.mxu0 %v2268_v17  ;;  %v49_v43 = vld [vmem:[%s2893_s1 + $0x100] sm:$0xff]  ;;  %v2350_v45 = vpack.c.bf16 %v40_v39, %v36_v38  ;;  %v2353_v46 = vpack.c.bf16 %v54_v36, %v50_v35  ;;  %1601 = vmatpush1.bf16.msra.mxu1 %v2326_v37  ;;  %v58_v47 = vld [vmem:[%s2893_s1 + $0x148] sm:$0xff]  ;;  %v2359_v48 = vpack.c.bf16 %v39_v41, %v35_v40  ;;  %v44_v49 = vld [vmem:[%s2893_s1 + $0xd8] sm:$0xff] }
   0xc   :  { %v53_v44 = vld [vmem:[%s2893_s1 + $0x120] sm:$0xff]  ;;  %v48_v50 = vld [vmem:[%s2893_s1 + $0xf8] sm:$0xff]  ;;  %v62_v51 = vld [vmem:[%s2893_s1 + $0x168] sm:$0xff] }
   0xd   :  { %1603 = vmatprep.subr.bf16.mxu1 %v2350_v45  ;;  %v2371_v52 = vpack.c.bf16 %v48_v50, %v44_v49  ;;  %v43_v53 = vld [vmem:[%s2893_s1 + $0xd0] sm:$0xff]  ;;  %v2380_v55 = vpack.c.bf16 %v53_v44, %v49_v43  ;;  %v52_v56 = vld [vmem:[%s2893_s1 + $0x118] sm:$0xff]  ;;  %v2389_v58 = vpack.c.bf16 %v62_v51, %v58_v47  ;;  %v57_v59 = vld [vmem:[%s2893_s1 + $0x140] sm:$0xff] }
   0xe   :  { %1573 = vmatpush1.bf16.msra.mxu0 %v2293_v26  ;;  %v47_v54 = vld [vmem:[%s2893_s1 + $0xf0] sm:$0xff]  ;;  %v56_v57 = vld [vmem:[%s2893_s1 + $0x138] sm:$0xff]  ;;  %v61_v60 = vld [vmem:[%s2893_s1 + $0x160] sm:$0xff] }
   0xf   :  { %1575 = vmatprep.subr.bf16.mxu0 %v2306_v30  ;;  %1605 = vmatpush1.bf16.msra.mxu1 %v2359_v48  ;;  %v66_v61 = vld [vmem:[%s2893_s1 + $0x188] sm:$0xff]  ;;  %v2401_v62 = vpack.c.bf16 %v47_v54, %v43_v53  ;;  %v2407_v0 = vpack.c.bf16 %v56_v57, %v52_v56  ;;  %v51_v1 = vld [vmem:[%s2893_s1 + $0x110] sm:$0xff]  ;;  %v60_v5 = vld [vmem:[%s2893_s1 + $0x158] sm:$0xff]  ;;  %v2422_v7 = vpack.c.bf16 %v61_v60, %v57_v59 }
  0x10   :  { %v70_v63 = vld [vmem:[%s2893_s1 + $0x1a8] sm:$0xff]  ;;  %1607 = vmatprep.subr.bf16.mxu1 %v2371_v52  ;;  %v55_v2 = vld [vmem:[%s2893_s1 + $0x130] sm:$0xff]  ;;  %v64_v6 = vld [vmem:[%s2893_s1 + $0x178] sm:$0xff] }
  0x11   :  { %v2425_v10 = vpack.c.bf16 %v70_v63, %v66_v61  ;;  %v65_v11 = vld [vmem:[%s2893_s1 + $0x180] sm:$0xff]  ;;  %v74_v13 = vld [vmem:[%s2893_s1 + $0x1c8] sm:$0xff]  ;;  %v2437_v15 = vpack.c.bf16 %v55_v2, %v51_v1  ;;  %v2443_v18 = vpack.c.bf16 %v64_v6, %v60_v5  ;;  %v59_v19 = vld [vmem:[%s2893_s1 + $0x150] sm:$0xff] }
  0x12   :  { %1577 = vmatpush1.bf16.msra.mxu0 %v2342_v42  ;;  %v69_v12 = vld [vmem:[%s2893_s1 + $0x1a0] sm:$0xff]  ;;  %v78_v16 = vld [vmem:[%s2893_s1 + $0x1e8] sm:$0xff]  ;;  %v63_v20 = vld [vmem:[%s2893_s1 + $0x170] sm:$0xff] }
  0x13   :  { %1579 = vmatprep.subr.bf16.mxu0 %v2353_v46  ;;  %1609 = vmatpush1.bf16.msra.mxu1 %v2401_v62  ;;  %v68_v21 = vld [vmem:[%s2893_s1 + $0x198] sm:$0xff]  ;;  %v2458_v24 = vpack.c.bf16 %v69_v12, %v65_v11  ;;  %v2461_v27 = vpack.c.bf16 %v78_v16, %v74_v13  ;;  %v73_v28 = vld [vmem:[%s2893_s1 + $0x1c0] sm:$0xff]  ;;  %v2470_v31 = vpack.c.bf16 %v63_v20, %v59_v19  ;;  %v67_v34 = vld [vmem:[%s2893_s1 + $0x190] sm:$0xff] }
  0x14   :  { %1611 = vmatprep.subr.bf16.mxu1 %v2407_v0  ;;  %v72_v23 = vld [vmem:[%s2893_s1 + $0x1b8] sm:$0xff]  ;;  %v77_v29 = vld [vmem:[%s2893_s1 + $0x1e0] sm:$0xff]  ;;  %v71_v35 = vld [vmem:[%s2893_s1 + $0x1b0] sm:$0xff] }
  0x15   :  { %v2473_v32 = vpack.c.bf16 %v72_v23, %v68_v21  ;;  %v76_v36 = vld [vmem:[%s2893_s1 + $0x1d8] sm:$0xff]  ;;  %v2488_v39 = vpack.c.bf16 %v77_v29, %v73_v28  ;;  %v2492_v40 = vpack.c.bf16 %v71_v35, %v67_v34  ;;  %v75_v43 = vld [vmem:[%s2893_s1 + $0x1d0] sm:$0xff]  ;;  %v83_v49 = vld [vmem:[%s2894_s0] sm:$0xff] }
  0x16   :  { %1581 = vmatpush1.bf16.msra.mxu0 %v2380_v55  ;;  %v80_v38 = vld [vmem:[%s2893_s1 + $0x1f8] sm:$0xff]  ;;  %v79_v44 = vld [vmem:[%s2893_s1 + $0x1f0] sm:$0xff]  ;;  %v84_v50 = vld [vmem:[%s2894_s0 + $0x8] sm:$0xff] }
  0x17   :  { %1583 = vmatprep.subr.bf16.mxu0 %v2389_v58  ;;  %1613 = vmatpush1.bf16.msra.mxu1 %v2437_v15  ;;  %v2495_v41 = vpack.c.bf16 %v80_v38, %v76_v36  ;;  %v2505_v47 = vpack.c.bf16 %v79_v44, %v75_v43  ;;  %v86_v60 = vld [vmem:[%s2894_s0 + $0x18] sm:$0xff]  ;;  %v85_v2 = vld [vmem:[%s2894_s0 + $0x10] sm:$0xff]  ;;  %v1506_v44 = vld [vmem:[%s2894_s0 + $0x20] sm:$0xff] }
  0x18   :  { %1615 = vmatprep.subr.bf16.mxu1 %v2443_v18 }
  0x1a   :  { %1585 = vmatpush1.bf16.msra.mxu0 %v2422_v7 }
  0x1b   :  { %1587 = vmatprep.subr.bf16.mxu0 %v2425_v10  ;;  %1617 = vmatpush1.bf16.msra.mxu1 %v2470_v31 }
  0x1c   :  { %1619 = vmatprep.subr.bf16.mxu1 %v2473_v32 }
  0x1e   :  { %1589 = vmatpush1.bf16.msra.mxu0 %v2458_v24 }
  0x1f   :  { %1591 = vmatprep.subr.bf16.mxu0 %v2461_v27  ;;  %1621 = vmatpush1.bf16.msra.mxu1 %v2492_v40 }
  0x20   :  { %1623 = vmatprep.subr.bf16.mxu1 %v2495_v41 }
  0x22   :  { %1593 = vmatpush1.bf16.msra.mxu0 %v2488_v39 }
  0x23   :  { %1627 = vmatprep.subr.bf16.mxu0 %v2230_v4  ;;  %1625 = vmatpush1.bf16.msra.mxu1 %v2505_v47 }
  0x24   :  { %1659 = vmatprep.subr.bf16.mxu1 %v2282_v22 }
  0x25   :  { %152 = vmatmul.mubr.f32.vlgmr.msra.gmra.mrb[0].mxu0 %v2203_v3 }
  0x26   :  { %1629 = vmatpush1.bf16.msra.mxu0 %v2241_v8  ;;  %327 = vmatprep.mubr.f32.mxu0 %v2203_v3 }
  0x27   :  { %1631 = vmatprep.subr.bf16.mxu0 %v2243_v9  ;;  %223 = vmatmul.mubr.f32.vlgmr.msra.gmra.mrb[0].mxu1 %v2203_v3 }
  0x28   :  { %1661 = vmatpush1.bf16.msra.mxu1 %v2290_v25  ;;  %398 = vmatprep.mubr.f32.mxu1 %v2203_v3 }
  0x29   :  { %1663 = vmatprep.subr.bf16.mxu1 %v2315_v33 }
  0x2a   :  { %1633 = vmatpush1.bf16.msra.mxu0 %v2259_v14 }
  0x2b   :  { %1635 = vmatprep.subr.bf16.mxu0 %v2268_v17 }
  0x2c   :  { %1665 = vmatpush1.bf16.msra.mxu1 %v2326_v37 }
  0x2d   :  { %1667 = vmatprep.subr.bf16.mxu1 %v2350_v45 }
  0x2e   :  { %1637 = vmatpush1.bf16.msra.mxu0 %v2293_v26 }
  0x2f   :  { %1639 = vmatprep.subr.bf16.mxu0 %v2306_v30 }
  0x30   :  { %1669 = vmatpush1.bf16.msra.mxu1 %v2359_v48 }
  0x31   :  { %1671 = vmatprep.subr.bf16.mxu1 %v2371_v52 }
  0x32   :  { %1641 = vmatpush1.bf16.msra.mxu0 %v2342_v42 }
  0x33   :  { %1643 = vmatprep.subr.bf16.mxu0 %v2353_v46 }
  0x34   :  { %1673 = vmatpush1.bf16.msra.mxu1 %v2401_v62 }
  0x35   :  { %1675 = vmatprep.subr.bf16.mxu1 %v2407_v0 }
  0x36   :  { %1645 = vmatpush1.bf16.msra.mxu0 %v2380_v55 }
  0x37   :  { %1647 = vmatprep.subr.bf16.mxu0 %v2389_v58 }
  0x38   :  { %1677 = vmatpush1.bf16.msra.mxu1 %v2437_v15 }
  0x39   :  { %1679 = vmatprep.subr.bf16.mxu1 %v2443_v18 }
  0x3a   :  { %1649 = vmatpush1.bf16.msra.mxu0 %v2422_v7 }
  0x3b   :  { %1651 = vmatprep.subr.bf16.mxu0 %v2425_v10 }
  0x3c   :  { %1681 = vmatpush1.bf16.msra.mxu1 %v2470_v31 }
  0x3d   :  { %1683 = vmatprep.subr.bf16.mxu1 %v2473_v32 }
  0x3e   :  { %1653 = vmatpush1.bf16.msra.mxu0 %v2458_v24 }
  0x3f   :  { %1655 = vmatprep.subr.bf16.mxu0 %v2461_v27 }
  0x40   :  { %1685 = vmatpush1.bf16.msra.mxu1 %v2492_v40 }
  0x41   :  { %1687 = vmatprep.subr.bf16.mxu1 %v2495_v41 }
  0x42   :  { %1657 = vmatpush1.bf16.msra.mxu0 %v2488_v39 }
  0x43   :  { %1691 = vmatprep.subr.bf16.mxu0 %v2230_v4 }
  0x44   :  { %1689 = vmatpush1.bf16.msra.mxu1 %v2505_v47 }
  0x45   :  { %1723 = vmatprep.subr.bf16.mxu1 %v2282_v22 }
  0xf8   :  { %v153_v51 = vpop.f32.mrb[0].mxu0 }
  0xf9   :  { %v229_v53 = vadd.f32 %v153_v51, %v83_v49  ;;  %v155_v54 = vpop.f32.mrb[1].mxu0  ;;  %v1507_v49 = vld [vmem:[%s2894_s0 + $0x28] sm:$0xff] }
  0xfa   :  { %v230_v56 = vadd.f32 %v155_v54, %v84_v50  ;;  %v224_v61 = vpop.f32.mrb[0].mxu1 }
  0xfb   :  { %v1503_v57 = vmul.f32 -1.442695, %v229_v53  ;;  %v226_v63 = vpop.f32.mrb[1].mxu1  ;;  %v231_v6 = vadd.f32 %v224_v61, %v85_v2  ;;  %v1509_v61 = vld [vmem:[%s2894_s0 + $0x38] sm:$0xff] }
  0xfc   :  { %v1504_v59 = vmul.f32 -1.442695, %v230_v56  ;;  %v232_v1 = vadd.f32 %v226_v63, %v86_v60 }
  0xfd   :  { %2075 = vpow2.f32 %v1503_v57 }
  0xfe   :  { %2077 = vpow2.f32 %v1504_v59  ;;  %v1505_v5 = vmul.f32 -1.442695, %v232_v1  ;;  %v1508_v1 = vld [vmem:[%s2894_s0 + $0x30] sm:$0xff] }
 0x100   :  { %2079 = vpow2.f32 %v1505_v5 }
 0x101   :  { %2081 = vtanh.f32 %v231_v6 }
 0x107   :  { %v2076_v11 = vpop.eup %2075 }
 0x108   :  { %v2078_v12 = vpop.eup %2077  ;;  %v236_v13 = vadd.f32 1.0, %v2076_v11 }
 0x109   :  { %v242_v16 = vadd.f32 1.0, %v2078_v12 }
 0x10a   :  { %2083 = vrcp.f32 %v236_v13  ;;  %v2080_v19 = vpop.eup %2079 }
 0x10b   :  { %2085 = vrcp.f32 %v242_v16  ;;  %v2082_v20 = vpop.eup %2081  ;;  %v249_v23 = vadd.f32 1.0, %v2080_v19 }
 0x10d   :  { %2087 = vrcp.f32 %v249_v23 }
 0x114   :  { %v2084_v21 = vpop.eup %2083 }
 0x115   :  { %v2086_v28 = vpop.eup %2085  ;;  %v253_v29 = vmul.f32 %v2084_v21, %v2082_v20 }
 0x116   :  { %v252_v34 = vmul.f32 0.0, %v2086_v28 }
 0x117   :  { %v2088_v36 = vpop.eup %2087 }
 0x118   :  { %v2559_v35 = vadd.f32 %v253_v29, %v252_v34 }
 0x11a   :  { %2089 = vtanh.f32 %v2559_v35 }
 0x124   :  { %v2090_v38 = vpop.eup %2089 }
 0x125   :  { %v256_v43 = vmul.f32 %v2090_v38, %v2088_v36 }
 0x127   :  { %257 = vst [vmem:[%s2895_s2] sm:$0xff] %v256_v43  ;;  %328 = vmatmul.mubr.f32.vlgmr.msra.gmra.mrb[2].mxu0 %v256_v43  ;;  %399 = vmatmul.mubr.f32.vlgmr.msra.gmra.mrb[2].mxu1 %v256_v43 }
 0x128   :  { %1693 = vmatpush1.bf16.msra.mxu0 %v2241_v8  ;;  %1725 = vmatpush1.bf16.msra.mxu1 %v2290_v25 }
 0x129   :  { %1695 = vmatprep.subr.bf16.mxu0 %v2243_v9  ;;  %1727 = vmatprep.subr.bf16.mxu1 %v2315_v33 }
 0x12a   :  { %504 = vmatprep.mubr.f32.mxu0 %v2203_v3  ;;  %575 = vmatprep.mubr.f32.mxu1 %v2203_v3 }
 0x12c   :  { %1697 = vmatpush1.bf16.msra.mxu0 %v2259_v14  ;;  %1729 = vmatpush1.bf16.msra.mxu1 %v2326_v37 }
 0x12d   :  { %1699 = vmatprep.subr.bf16.mxu0 %v2268_v17  ;;  %1731 = vmatprep.subr.bf16.mxu1 %v2350_v45 }
 0x130   :  { %1701 = vmatpush1.bf16.msra.mxu0 %v2293_v26  ;;  %1733 = vmatpush1.bf16.msra.mxu1 %v2359_v48 }
 0x131   :  { %1703 = vmatprep.subr.bf16.mxu0 %v2306_v30  ;;  %1735 = vmatprep.subr.bf16.mxu1 %v2371_v52 }
 0x134   :  { %1705 = vmatpush1.bf16.msra.mxu0 %v2342_v42  ;;  %1737 = vmatpush1.bf16.msra.mxu1 %v2401_v62 }
 0x135   :  { %1707 = vmatprep.subr.bf16.mxu0 %v2353_v46  ;;  %1739 = vmatprep.subr.bf16.mxu1 %v2407_v0 }
 0x138   :  { %1709 = vmatpush1.bf16.msra.mxu0 %v2380_v55  ;;  %1741 = vmatpush1.bf16.msra.mxu1 %v2437_v15 }
 0x139   :  { %1711 = vmatprep.subr.bf16.mxu0 %v2389_v58  ;;  %1743 = vmatprep.subr.bf16.mxu1 %v2443_v18 }
 0x13c   :  { %1713 = vmatpush1.bf16.msra.mxu0 %v2422_v7  ;;  %1745 = vmatpush1.bf16.msra.mxu1 %v2470_v31 }
 0x13d   :  { %1715 = vmatprep.subr.bf16.mxu0 %v2425_v10  ;;  %1747 = vmatprep.subr.bf16.mxu1 %v2473_v32 }
 0x140   :  { %1717 = vmatpush1.bf16.msra.mxu0 %v2458_v24  ;;  %1749 = vmatpush1.bf16.msra.mxu1 %v2492_v40 }
 0x141   :  { %1719 = vmatprep.subr.bf16.mxu0 %v2461_v27  ;;  %1751 = vmatprep.subr.bf16.mxu1 %v2495_v41 }
 0x144   :  { %1721 = vmatpush1.bf16.msra.mxu0 %v2488_v39  ;;  %1753 = vmatpush1.bf16.msra.mxu1 %v2505_v47 }
 0x145   :  { %1755 = vmatprep.subr.bf16.mxu0 %v2230_v4  ;;  %1787 = vmatprep.subr.bf16.mxu1 %v2282_v22 }
 0x1fa   :  { %v329_v50 = vpop.f32.mrb[2].mxu0  ;;  %v400_v51 = vpop.f32.mrb[2].mxu1 }
 0x1fb   :  { %v405_v53 = vadd.f32 %v1506_v44, %v329_v50  ;;  %v331_v54 = vpop.f32.mrb[3].mxu0  ;;  %v402_v56 = vpop.f32.mrb[3].mxu1  ;;  %v407_v5 = vadd.f32 %v1508_v1, %v400_v51  ;;  %v1515_v44 = vld [vmem:[%s2894_s0 + $0x48] sm:$0xff] }
 0x1fc   :  { %v406_v57 = vadd.f32 %v1507_v49, %v331_v54  ;;  %v408_v63 = vadd.f32 %v1509_v61, %v402_v56 }
 0x1fd   :  { %v1510_v59 = vmul.f32 -1.442695, %v405_v53 }
 0x1fe   :  { %v1511_v60 = vmul.f32 -1.442695, %v406_v57  ;;  %v1512_v2 = vmul.f32 -1.442695, %v408_v63  ;;  %v1516_v63 = vld [vmem:[%s2894_s0 + $0x50] sm:$0xff] }
 0x1ff   :  { %2091 = vpow2.f32 %v1510_v59 }
 0x200   :  { %2093 = vpow2.f32 %v1511_v60  ;;  %v1517_v60 = vld [vmem:[%s2894_s0 + $0x58] sm:$0xff] }
 0x201   :  { %2095 = vpow2.f32 %v1512_v2 }
 0x202   :  { %2097 = vtanh.f32 %v407_v5 }
 0x209   :  { %v2092_v6 = vpop.eup %2091 }
 0x20a   :  { %v2094_v11 = vpop.eup %2093  ;;  %v412_v12 = vadd.f32 1.0, %v2092_v6 }
 0x20b   :  { %v418_v13 = vadd.f32 1.0, %v2094_v11  ;;  %v2096_v16 = vpop.eup %2095 }
 0x20c   :  { %2099 = vrcp.f32 %v412_v12  ;;  %v2098_v19 = vpop.eup %2097  ;;  %v425_v28 = vadd.f32 1.0, %v2096_v16 }
 0x20d   :  { %2101 = vrcp.f32 %v418_v13 }
 0x20e   :  { %2103 = vrcp.f32 %v425_v28 }
 0x216   :  { %v2100_v20 = vpop.eup %2099 }
 0x217   :  { %v2102_v21 = vpop.eup %2101  ;;  %v429_v23 = vmul.f32 %v2100_v20, %v2098_v19 }
 0x218   :  { %v428_v29 = vmul.f32 %v2102_v21, %v2559_v35  ;;  %v2104_v36 = vpop.eup %2103  ;;  %v1514_v35 = vld [vmem:[%s2894_s0 + $0x40] sm:$0xff] }
 0x21a   :  { %v2612_v34 = vadd.f32 %v429_v23, %v428_v29 }
 0x21c   :  { %2105 = vtanh.f32 %v2612_v34 }
 0x226   :  { %v2106_v38 = vpop.eup %2105 }
 0x227   :  { %v432_v43 = vmul.f32 %v2106_v38, %v2104_v36 }
 0x229   :  { %1513 = vst [vmem:[%s2895_s2 + $0x8] sm:$0xff] %v432_v43  ;;  %505 = vmatmul.mubr.f32.vlgmr.msra.gmra.mrb[4].mxu0 %v432_v43  ;;  %576 = vmatmul.mubr.f32.vlgmr.msra.gmra.mrb[4].mxu1 %v432_v43 }
 0x22a   :  { %1757 = vmatpush1.bf16.msra.mxu0 %v2241_v8  ;;  %1789 = vmatpush1.bf16.msra.mxu1 %v2290_v25 }
 0x22b   :  { %1759 = vmatprep.subr.bf16.mxu0 %v2243_v9  ;;  %1791 = vmatprep.subr.bf16.mxu1 %v2315_v33 }
 0x22c   :  { %681 = vmatprep.mubr.f32.mxu0 %v2203_v3  ;;  %752 = vmatprep.mubr.f32.mxu1 %v2203_v3 }
 0x22e   :  { %1761 = vmatpush1.bf16.msra.mxu0 %v2259_v14  ;;  %1793 = vmatpush1.bf16.msra.mxu1 %v2326_v37 }
 0x22f   :  { %1763 = vmatprep.subr.bf16.mxu0 %v2268_v17  ;;  %1795 = vmatprep.subr.bf16.mxu1 %v2350_v45 }
 0x232   :  { %1765 = vmatpush1.bf16.msra.mxu0 %v2293_v26  ;;  %1797 = vmatpush1.bf16.msra.mxu1 %v2359_v48 }
 0x233   :  { %1767 = vmatprep.subr.bf16.mxu0 %v2306_v30  ;;  %1799 = vmatprep.subr.bf16.mxu1 %v2371_v52 }
 0x236   :  { %1769 = vmatpush1.bf16.msra.mxu0 %v2342_v42  ;;  %1801 = vmatpush1.bf16.msra.mxu1 %v2401_v62 }
 0x237   :  { %1771 = vmatprep.subr.bf16.mxu0 %v2353_v46  ;;  %1803 = vmatprep.subr.bf16.mxu1 %v2407_v0 }
 0x23a   :  { %1773 = vmatpush1.bf16.msra.mxu0 %v2380_v55  ;;  %1805 = vmatpush1.bf16.msra.mxu1 %v2437_v15 }
 0x23b   :  { %1775 = vmatprep.subr.bf16.mxu0 %v2389_v58  ;;  %1807 = vmatprep.subr.bf16.mxu1 %v2443_v18 }
 0x23e   :  { %1777 = vmatpush1.bf16.msra.mxu0 %v2422_v7  ;;  %1809 = vmatpush1.bf16.msra.mxu1 %v2470_v31 }
 0x23f   :  { %1779 = vmatprep.subr.bf16.mxu0 %v2425_v10  ;;  %1811 = vmatprep.subr.bf16.mxu1 %v2473_v32 }
 0x242   :  { %1781 = vmatpush1.bf16.msra.mxu0 %v2458_v24  ;;  %1813 = vmatpush1.bf16.msra.mxu1 %v2492_v40 }
 0x243   :  { %1783 = vmatprep.subr.bf16.mxu0 %v2461_v27  ;;  %1815 = vmatprep.subr.bf16.mxu1 %v2495_v41 }
 0x246   :  { %1785 = vmatpush1.bf16.msra.mxu0 %v2488_v39  ;;  %1817 = vmatpush1.bf16.msra.mxu1 %v2505_v47 }
 0x247   :  { %1819 = vmatprep.subr.bf16.mxu0 %v2230_v4  ;;  %1851 = vmatprep.subr.bf16.mxu1 %v2282_v22 }
 0x2fc   :  { %v506_v49 = vpop.f32.mrb[4].mxu0  ;;  %v577_v50 = vpop.f32.mrb[4].mxu1 }
 0x2fd   :  { %v582_v51 = vadd.f32 %v1514_v35, %v506_v49  ;;  %v508_v53 = vpop.f32.mrb[5].mxu0  ;;  %v579_v54 = vpop.f32.mrb[5].mxu1  ;;  %v584_v2 = vadd.f32 %v1516_v63, %v577_v50  ;;  %v1523_v35 = vld [vmem:[%s2894_s0 + $0x68] sm:$0xff] }
 0x2fe   :  { %v583_v56 = vadd.f32 %v1515_v44, %v508_v53  ;;  %v585_v61 = vadd.f32 %v1517_v60, %v579_v54 }
 0x2ff   :  { %v1518_v57 = vmul.f32 -1.442695, %v582_v51 }
 0x300   :  { %v1519_v59 = vmul.f32 -1.442695, %v583_v56  ;;  %v1520_v1 = vmul.f32 -1.442695, %v585_v61  ;;  %v1524_v61 = vld [vmem:[%s2894_s0 + $0x70] sm:$0xff] }
 0x301   :  { %2107 = vpow2.f32 %v1518_v57 }
 0x302   :  { %2109 = vpow2.f32 %v1519_v59  ;;  %v1525_v59 = vld [vmem:[%s2894_s0 + $0x78] sm:$0xff] }
 0x303   :  { %2111 = vpow2.f32 %v1520_v1 }
 0x304   :  { %2113 = vtanh.f32 %v584_v2 }
 0x30b   :  { %v2108_v5 = vpop.eup %2107 }
 0x30c   :  { %v2110_v6 = vpop.eup %2109  ;;  %v589_v11 = vadd.f32 1.0, %v2108_v5 }
 0x30d   :  { %v595_v12 = vadd.f32 1.0, %v2110_v6  ;;  %v2112_v13 = vpop.eup %2111 }
 0x30e   :  { %2115 = vrcp.f32 %v589_v11  ;;  %v2114_v16 = vpop.eup %2113  ;;  %v602_v23 = vadd.f32 1.0, %v2112_v13 }
 0x30f   :  { %2117 = vrcp.f32 %v595_v12 }
 0x310   :  { %2119 = vrcp.f32 %v602_v23 }
 0x318   :  { %v2116_v19 = vpop.eup %2115 }
 0x319   :  { %v2118_v20 = vpop.eup %2117  ;;  %v606_v21 = vmul.f32 %v2116_v19, %v2114_v16 }
 0x31a   :  { %v605_v28 = vmul.f32 %v2118_v20, %v2612_v34  ;;  %v2120_v36 = vpop.eup %2119  ;;  %v1522_v34 = vld [vmem:[%s2894_s0 + $0x60] sm:$0xff] }
 0x31c   :  { %v2665_v29 = vadd.f32 %v606_v21, %v605_v28 }
 0x31e   :  { %2121 = vtanh.f32 %v2665_v29 }
 0x328   :  { %v2122_v38 = vpop.eup %2121 }
 0x329   :  { %v609_v43 = vmul.f32 %v2122_v38, %v2120_v36 }
 0x32b   :  { %1521 = vst [vmem:[%s2895_s2 + $0x10] sm:$0xff] %v609_v43  ;;  %682 = vmatmul.mubr.f32.vlgmr.msra.gmra.mrb[6].mxu0 %v609_v43  ;;  %753 = vmatmul.mubr.f32.vlgmr.msra.gmra.mrb[6].mxu1 %v609_v43 }
 0x32c   :  { %1821 = vmatpush1.bf16.msra.mxu0 %v2241_v8  ;;  %1853 = vmatpush1.bf16.msra.mxu1 %v2290_v25 }
 0x32d   :  { %1823 = vmatprep.subr.bf16.mxu0 %v2243_v9  ;;  %1855 = vmatprep.subr.bf16.mxu1 %v2315_v33 }
 0x32e   :  { %858 = vmatprep.mubr.f32.mxu0 %v2203_v3  ;;  %929 = vmatprep.mubr.f32.mxu1 %v2203_v3 }
 0x330   :  { %1825 = vmatpush1.bf16.msra.mxu0 %v2259_v14  ;;  %1857 = vmatpush1.bf16.msra.mxu1 %v2326_v37 }
 0x331   :  { %1827 = vmatprep.subr.bf16.mxu0 %v2268_v17  ;;  %1859 = vmatprep.subr.bf16.mxu1 %v2350_v45 }
 0x334   :  { %1829 = vmatpush1.bf16.msra.mxu0 %v2293_v26  ;;  %1861 = vmatpush1.bf16.msra.mxu1 %v2359_v48 }
 0x335   :  { %1831 = vmatprep.subr.bf16.mxu0 %v2306_v30  ;;  %1863 = vmatprep.subr.bf16.mxu1 %v2371_v52 }
 0x338   :  { %1833 = vmatpush1.bf16.msra.mxu0 %v2342_v42  ;;  %1865 = vmatpush1.bf16.msra.mxu1 %v2401_v62 }
 0x339   :  { %1835 = vmatprep.subr.bf16.mxu0 %v2353_v46  ;;  %1867 = vmatprep.subr.bf16.mxu1 %v2407_v0 }
 0x33c   :  { %1837 = vmatpush1.bf16.msra.mxu0 %v2380_v55  ;;  %1869 = vmatpush1.bf16.msra.mxu1 %v2437_v15 }
 0x33d   :  { %1839 = vmatprep.subr.bf16.mxu0 %v2389_v58  ;;  %1871 = vmatprep.subr.bf16.mxu1 %v2443_v18 }
 0x340   :  { %1841 = vmatpush1.bf16.msra.mxu0 %v2422_v7  ;;  %1873 = vmatpush1.bf16.msra.mxu1 %v2470_v31 }
 0x341   :  { %1843 = vmatprep.subr.bf16.mxu0 %v2425_v10  ;;  %1875 = vmatprep.subr.bf16.mxu1 %v2473_v32 }
 0x344   :  { %1845 = vmatpush1.bf16.msra.mxu0 %v2458_v24  ;;  %1877 = vmatpush1.bf16.msra.mxu1 %v2492_v40 }
 0x345   :  { %1847 = vmatprep.subr.bf16.mxu0 %v2461_v27  ;;  %1879 = vmatprep.subr.bf16.mxu1 %v2495_v41 }
 0x348   :  { %1849 = vmatpush1.bf16.msra.mxu0 %v2488_v39  ;;  %1881 = vmatpush1.bf16.msra.mxu1 %v2505_v47 }
 0x349   :  { %1883 = vmatprep.subr.bf16.mxu0 %v2230_v4  ;;  %1915 = vmatprep.subr.bf16.mxu1 %v2282_v22 }
 0x3fe   :  { %v683_v44 = vpop.f32.mrb[6].mxu0  ;;  %v754_v49 = vpop.f32.mrb[6].mxu1 }
 0x3ff   :  { %v759_v50 = vadd.f32 %v1522_v34, %v683_v44  ;;  %v685_v51 = vpop.f32.mrb[7].mxu0  ;;  %v756_v53 = vpop.f32.mrb[7].mxu1  ;;  %v761_v1 = vadd.f32 %v1524_v61, %v754_v49  ;;  %v1531_v34 = vld [vmem:[%s2894_s0 + $0x88] sm:$0xff] }
 0x400   :  { %v760_v54 = vadd.f32 %v1523_v35, %v685_v51  ;;  %v762_v60 = vadd.f32 %v1525_v59, %v756_v53 }
 0x401   :  { %v1526_v56 = vmul.f32 -1.442695, %v759_v50 }
 0x402   :  { %v1527_v57 = vmul.f32 -1.442695, %v760_v54  ;;  %v1528_v63 = vmul.f32 -1.442695, %v762_v60  ;;  %v1532_v60 = vld [vmem:[%s2894_s0 + $0x90] sm:$0xff] }
 0x403   :  { %2123 = vpow2.f32 %v1526_v56 }
 0x404   :  { %2125 = vpow2.f32 %v1527_v57  ;;  %v1533_v57 = vld [vmem:[%s2894_s0 + $0x98] sm:$0xff] }
 0x405   :  { %2127 = vpow2.f32 %v1528_v63 }
 0x406   :  { %2129 = vtanh.f32 %v761_v1 }
 0x40d   :  { %v2124_v2 = vpop.eup %2123 }
 0x40e   :  { %v2126_v5 = vpop.eup %2125  ;;  %v766_v6 = vadd.f32 1.0, %v2124_v2 }
 0x40f   :  { %v772_v11 = vadd.f32 1.0, %v2126_v5  ;;  %v2128_v12 = vpop.eup %2127 }
 0x410   :  { %2131 = vrcp.f32 %v766_v6  ;;  %v2130_v13 = vpop.eup %2129  ;;  %v779_v21 = vadd.f32 1.0, %v2128_v12 }
 0x411   :  { %2133 = vrcp.f32 %v772_v11 }
 0x412   :  { %2135 = vrcp.f32 %v779_v21 }
 0x41a   :  { %v2132_v16 = vpop.eup %2131 }
 0x41b   :  { %v2134_v19 = vpop.eup %2133  ;;  %v783_v20 = vmul.f32 %v2132_v16, %v2130_v13 }
 0x41c   :  { %v782_v23 = vmul.f32 %v2134_v19, %v2665_v29  ;;  %v2136_v36 = vpop.eup %2135  ;;  %v1530_v29 = vld [vmem:[%s2894_s0 + $0x80] sm:$0xff] }
 0x41e   :  { %v2718_v28 = vadd.f32 %v783_v20, %v782_v23 }
 0x420   :  { %2137 = vtanh.f32 %v2718_v28 }
 0x42a   :  { %v2138_v38 = vpop.eup %2137 }
 0x42b   :  { %v786_v43 = vmul.f32 %v2138_v38, %v2136_v36 }
 0x42d   :  { %1529 = vst [vmem:[%s2895_s2 + $0x18] sm:$0xff] %v786_v43  ;;  %859 = vmatmul.mubr.f32.vlgmr.msra.gmra.mrb[8].mxu0 %v786_v43  ;;  %930 = vmatmul.mubr.f32.vlgmr.msra.gmra.mrb[8].mxu1 %v786_v43 }
 0x42e   :  { %1885 = vmatpush1.bf16.msra.mxu0 %v2241_v8  ;;  %1917 = vmatpush1.bf16.msra.mxu1 %v2290_v25 }
 0x42f   :  { %1887 = vmatprep.subr.bf16.mxu0 %v2243_v9  ;;  %1919 = vmatprep.subr.bf16.mxu1 %v2315_v33 }
 0x430   :  { %1035 = vmatprep.mubr.f32.mxu0 %v2203_v3  ;;  %1106 = vmatprep.mubr.f32.mxu1 %v2203_v3 }
 0x432   :  { %1889 = vmatpush1.bf16.msra.mxu0 %v2259_v14  ;;  %1921 = vmatpush1.bf16.msra.mxu1 %v2326_v37 }
 0x433   :  { %1891 = vmatprep.subr.bf16.mxu0 %v2268_v17  ;;  %1923 = vmatprep.subr.bf16.mxu1 %v2350_v45 }
 0x436   :  { %1893 = vmatpush1.bf16.msra.mxu0 %v2293_v26  ;;  %1925 = vmatpush1.bf16.msra.mxu1 %v2359_v48 }
 0x437   :  { %1895 = vmatprep.subr.bf16.mxu0 %v2306_v30  ;;  %1927 = vmatprep.subr.bf16.mxu1 %v2371_v52 }
 0x43a   :  { %1897 = vmatpush1.bf16.msra.mxu0 %v2342_v42  ;;  %1929 = vmatpush1.bf16.msra.mxu1 %v2401_v62 }
 0x43b   :  { %1899 = vmatprep.subr.bf16.mxu0 %v2353_v46  ;;  %1931 = vmatprep.subr.bf16.mxu1 %v2407_v0 }
 0x43e   :  { %1901 = vmatpush1.bf16.msra.mxu0 %v2380_v55  ;;  %1933 = vmatpush1.bf16.msra.mxu1 %v2437_v15 }
 0x43f   :  { %1903 = vmatprep.subr.bf16.mxu0 %v2389_v58  ;;  %1935 = vmatprep.subr.bf16.mxu1 %v2443_v18 }
 0x442   :  { %1905 = vmatpush1.bf16.msra.mxu0 %v2422_v7  ;;  %1937 = vmatpush1.bf16.msra.mxu1 %v2470_v31 }
 0x443   :  { %1907 = vmatprep.subr.bf16.mxu0 %v2425_v10  ;;  %1939 = vmatprep.subr.bf16.mxu1 %v2473_v32 }
 0x446   :  { %1909 = vmatpush1.bf16.msra.mxu0 %v2458_v24  ;;  %1941 = vmatpush1.bf16.msra.mxu1 %v2492_v40 }
 0x447   :  { %1911 = vmatprep.subr.bf16.mxu0 %v2461_v27  ;;  %1943 = vmatprep.subr.bf16.mxu1 %v2495_v41 }
 0x44a   :  { %1913 = vmatpush1.bf16.msra.mxu0 %v2488_v39  ;;  %1945 = vmatpush1.bf16.msra.mxu1 %v2505_v47 }
 0x44b   :  { %1947 = vmatprep.subr.bf16.mxu0 %v2230_v4  ;;  %1979 = vmatprep.subr.bf16.mxu1 %v2282_v22 }
 0x500   :  { %v860_v35 = vpop.f32.mrb[8].mxu0  ;;  %v931_v44 = vpop.f32.mrb[8].mxu1 }
 0x501   :  { %v936_v49 = vadd.f32 %v1530_v29, %v860_v35  ;;  %v862_v50 = vpop.f32.mrb[9].mxu0  ;;  %v933_v51 = vpop.f32.mrb[9].mxu1  ;;  %v938_v63 = vadd.f32 %v1532_v60, %v931_v44  ;;  %v1539_v29 = vld [vmem:[%s2894_s0 + $0xa8] sm:$0xff] }
 0x502   :  { %v937_v53 = vadd.f32 %v1531_v34, %v862_v50  ;;  %v939_v59 = vadd.f32 %v1533_v57, %v933_v51 }
 0x503   :  { %v1534_v54 = vmul.f32 -1.442695, %v936_v49 }
 0x504   :  { %v1535_v56 = vmul.f32 -1.442695, %v937_v53  ;;  %v1536_v61 = vmul.f32 -1.442695, %v939_v59 }
 0x505   :  { %2139 = vpow2.f32 %v1534_v54 }
 0x506   :  { %2141 = vpow2.f32 %v1535_v56  ;;  %v1540_v56 = vld [vmem:[%s2894_s0 + $0xb0] sm:$0xff] }
 0x507   :  { %2143 = vpow2.f32 %v1536_v61 }
 0x508   :  { %2145 = vtanh.f32 %v938_v63 }
 0x50f   :  { %v2140_v1 = vpop.eup %2139 }
 0x510   :  { %v2142_v2 = vpop.eup %2141  ;;  %v943_v5 = vadd.f32 1.0, %v2140_v1 }
 0x511   :  { %v949_v6 = vadd.f32 1.0, %v2142_v2  ;;  %v2144_v11 = vpop.eup %2143 }
 0x512   :  { %2147 = vrcp.f32 %v943_v5  ;;  %v2146_v12 = vpop.eup %2145  ;;  %v956_v20 = vadd.f32 1.0, %v2144_v11 }
 0x513   :  { %2149 = vrcp.f32 %v949_v6 }
 0x514   :  { %2151 = vrcp.f32 %v956_v20 }
 0x51c   :  { %v2148_v13 = vpop.eup %2147 }
 0x51d   :  { %v2150_v16 = vpop.eup %2149  ;;  %v960_v19 = vmul.f32 %v2148_v13, %v2146_v12 }
 0x51e   :  { %v959_v21 = vmul.f32 %v2150_v16, %v2718_v28  ;;  %v2152_v36 = vpop.eup %2151  ;;  %v1538_v28 = vld [vmem:[%s2894_s0 + $0xa0] sm:$0xff] }
 0x520   :  { %v2771_v23 = vadd.f32 %v960_v19, %v959_v21 }
 0x522   :  { %2153 = vtanh.f32 %v2771_v23 }
 0x52c   :  { %v2154_v38 = vpop.eup %2153 }
 0x52d   :  { %v963_v43 = vmul.f32 %v2154_v38, %v2152_v36 }
 0x52f   :  { %1537 = vst [vmem:[%s2895_s2 + $0x20] sm:$0xff] %v963_v43  ;;  %1036 = vmatmul.mubr.f32.vlgmr.msra.gmra.mrb[10].mxu0 %v963_v43  ;;  %1107 = vmatmul.mubr.f32.vlgmr.msra.gmra.mrb[10].mxu1 %v963_v43 }
 0x530   :  { %1949 = vmatpush1.bf16.msra.mxu0 %v2241_v8  ;;  %1981 = vmatpush1.bf16.msra.mxu1 %v2290_v25 }
 0x531   :  { %1951 = vmatprep.subr.bf16.mxu0 %v2243_v9  ;;  %1983 = vmatprep.subr.bf16.mxu1 %v2315_v33 }
 0x532   :  { %1212 = vmatprep.mubr.f32.mxu0 %v2203_v3  ;;  %1283 = vmatprep.mubr.f32.mxu1 %v2203_v3 }
 0x534   :  { %1953 = vmatpush1.bf16.msra.mxu0 %v2259_v14  ;;  %1985 = vmatpush1.bf16.msra.mxu1 %v2326_v37 }
 0x535   :  { %1955 = vmatprep.subr.bf16.mxu0 %v2268_v17  ;;  %1987 = vmatprep.subr.bf16.mxu1 %v2350_v45 }
 0x538   :  { %1957 = vmatpush1.bf16.msra.mxu0 %v2293_v26  ;;  %1989 = vmatpush1.bf16.msra.mxu1 %v2359_v48 }
 0x539   :  { %1959 = vmatprep.subr.bf16.mxu0 %v2306_v30  ;;  %1991 = vmatprep.subr.bf16.mxu1 %v2371_v52 }
 0x53c   :  { %1961 = vmatpush1.bf16.msra.mxu0 %v2342_v42  ;;  %1993 = vmatpush1.bf16.msra.mxu1 %v2401_v62 }
 0x53d   :  { %1963 = vmatprep.subr.bf16.mxu0 %v2353_v46  ;;  %1995 = vmatprep.subr.bf16.mxu1 %v2407_v0 }
 0x540   :  { %1965 = vmatpush1.bf16.msra.mxu0 %v2380_v55  ;;  %1997 = vmatpush1.bf16.msra.mxu1 %v2437_v15 }
 0x541   :  { %1967 = vmatprep.subr.bf16.mxu0 %v2389_v58  ;;  %1999 = vmatprep.subr.bf16.mxu1 %v2443_v18 }
 0x544   :  { %1969 = vmatpush1.bf16.msra.mxu0 %v2422_v7  ;;  %2001 = vmatpush1.bf16.msra.mxu1 %v2470_v31 }
 0x545   :  { %1971 = vmatprep.subr.bf16.mxu0 %v2425_v10  ;;  %2003 = vmatprep.subr.bf16.mxu1 %v2473_v32 }
 0x548   :  { %1973 = vmatpush1.bf16.msra.mxu0 %v2458_v24  ;;  %2005 = vmatpush1.bf16.msra.mxu1 %v2492_v40 }
 0x549   :  { %1975 = vmatprep.subr.bf16.mxu0 %v2461_v27  ;;  %2007 = vmatprep.subr.bf16.mxu1 %v2495_v41 }
 0x54c   :  { %1977 = vmatpush1.bf16.msra.mxu0 %v2488_v39  ;;  %2009 = vmatpush1.bf16.msra.mxu1 %v2505_v47 }
 0x54d   :  { %2011 = vmatprep.subr.bf16.mxu0 %v2230_v4  ;;  %2043 = vmatprep.subr.bf16.mxu1 %v2282_v22  ;;  %v1541_v4 = vld [vmem:[%s2894_s0 + $0xb8] sm:$0xff] }
 0x602   :  { %v1037_v34 = vpop.f32.mrb[10].mxu0  ;;  %v1108_v35 = vpop.f32.mrb[10].mxu1 }
 0x603   :  { %v1113_v44 = vadd.f32 %v1538_v28, %v1037_v34  ;;  %v1039_v49 = vpop.f32.mrb[11].mxu0  ;;  %v1110_v50 = vpop.f32.mrb[11].mxu1  ;;  %v1115_v59 = vadd.f32 %v1540_v56, %v1108_v35 }
 0x604   :  { %v1114_v51 = vadd.f32 %v1539_v29, %v1039_v49  ;;  %v1116_v22 = vadd.f32 %v1541_v4, %v1110_v50  ;;  %v1557_v50 = vld [vmem:[%s2894_s0 + $0xf8] sm:$0xff] }
 0x605   :  { %v1542_v53 = vmul.f32 -1.442695, %v1113_v44 }
 0x606   :  { %v1543_v54 = vmul.f32 -1.442695, %v1114_v51  ;;  %v1544_v57 = vmul.f32 -1.442695, %v1116_v22 }
 0x607   :  { %2155 = vpow2.f32 %v1542_v53  ;;  %v1556_v53 = vld [vmem:[%s2894_s0 + $0xf0] sm:$0xff] }
 0x608   :  { %2157 = vpow2.f32 %v1543_v54 }
 0x609   :  { %2159 = vpow2.f32 %v1544_v57 }
 0x60a   :  { %2161 = vtanh.f32 %v1115_v59 }
 0x611   :  { %v2156_v60 = vpop.eup %2155 }
 0x612   :  { %v2158_v61 = vpop.eup %2157  ;;  %v1120_v63 = vadd.f32 1.0, %v2156_v60 }
 0x613   :  { %v1126_v1 = vadd.f32 1.0, %v2158_v61  ;;  %v2160_v2 = vpop.eup %2159 }
 0x614   :  { %2163 = vrcp.f32 %v1120_v63  ;;  %v2162_v5 = vpop.eup %2161  ;;  %v1133_v13 = vadd.f32 1.0, %v2160_v2 }
 0x615   :  { %2165 = vrcp.f32 %v1126_v1 }
 0x616   :  { %2167 = vrcp.f32 %v1133_v13 }
 0x61e   :  { %v2164_v6 = vpop.eup %2163 }
 0x61f   :  { %v2166_v11 = vpop.eup %2165  ;;  %v1137_v12 = vmul.f32 %v2164_v6, %v2162_v5 }
 0x620   :  { %v1136_v16 = vmul.f32 %v2166_v11, %v2771_v23  ;;  %v2168_v20 = vpop.eup %2167  ;;  %v1555_v23 = vld [vmem:[%s2894_s0 + $0xe8] sm:$0xff] }
 0x622   :  { %v2824_v19 = vadd.f32 %v1137_v12, %v1136_v16 }
 0x624   :  { %2169 = vtanh.f32 %v2824_v19 }
 0x62e   :  { %v2170_v21 = vpop.eup %2169 }
 0x62f   :  { %v1140_v36 = vmul.f32 %v2170_v21, %v2168_v20 }
 0x631   :  { %1545 = vst [vmem:[%s2895_s2 + $0x28] sm:$0xff] %v1140_v36  ;;  %1213 = vmatmul.mubr.f32.vlgmr.msra.gmra.mrb[12].mxu0 %v1140_v36  ;;  %1284 = vmatmul.mubr.f32.vlgmr.msra.gmra.mrb[12].mxu1 %v1140_v36 }
 0x632   :  { %2013 = vmatpush1.bf16.msra.mxu0 %v2241_v8  ;;  %2045 = vmatpush1.bf16.msra.mxu1 %v2290_v25  ;;  %v1547_v8 = vld [vmem:[%s2894_s0 + $0xc8] sm:$0xff] }
 0x633   :  { %2015 = vmatprep.subr.bf16.mxu0 %v2243_v9  ;;  %2047 = vmatprep.subr.bf16.mxu1 %v2315_v33 }
 0x634   :  { %1389 = vmatprep.mubr.f32.mxu0 %v2203_v3  ;;  %1460 = vmatprep.mubr.f32.mxu1 %v2203_v3  ;;  %v1546_v3 = vld [vmem:[%s2894_s0 + $0xc0] sm:$0xff] }
 0x636   :  { %2017 = vmatpush1.bf16.msra.mxu0 %v2259_v14  ;;  %2049 = vmatpush1.bf16.msra.mxu1 %v2326_v37 }
 0x637   :  { %2019 = vmatprep.subr.bf16.mxu0 %v2268_v17  ;;  %2051 = vmatprep.subr.bf16.mxu1 %v2350_v45 }
 0x63a   :  { %2021 = vmatpush1.bf16.msra.mxu0 %v2293_v26  ;;  %2053 = vmatpush1.bf16.msra.mxu1 %v2359_v48 }
 0x63b   :  { %2023 = vmatprep.subr.bf16.mxu0 %v2306_v30  ;;  %2055 = vmatprep.subr.bf16.mxu1 %v2371_v52 }
 0x63e   :  { %2025 = vmatpush1.bf16.msra.mxu0 %v2342_v42  ;;  %2057 = vmatpush1.bf16.msra.mxu1 %v2401_v62  ;;  %v1549_v42 = vld [vmem:[%s2894_s0 + $0xd8] sm:$0xff] }
 0x63f   :  { %2027 = vmatprep.subr.bf16.mxu0 %v2353_v46  ;;  %2059 = vmatprep.subr.bf16.mxu1 %v2407_v0  ;;  %v1548_v46 = vld [vmem:[%s2894_s0 + $0xd0] sm:$0xff] }
 0x642   :  { %2029 = vmatpush1.bf16.msra.mxu0 %v2380_v55  ;;  %2061 = vmatpush1.bf16.msra.mxu1 %v2437_v15 }
 0x643   :  { %2031 = vmatprep.subr.bf16.mxu0 %v2389_v58  ;;  %2063 = vmatprep.subr.bf16.mxu1 %v2443_v18 }
 0x646   :  { %2033 = vmatpush1.bf16.msra.mxu0 %v2422_v7  ;;  %2065 = vmatpush1.bf16.msra.mxu1 %v2470_v31 }
 0x647   :  { %2035 = vmatprep.subr.bf16.mxu0 %v2425_v10  ;;  %2067 = vmatprep.subr.bf16.mxu1 %v2473_v32 }
 0x64a   :  { %2037 = vmatpush1.bf16.msra.mxu0 %v2458_v24  ;;  %2069 = vmatpush1.bf16.msra.mxu1 %v2492_v40 }
 0x64b   :  { %2039 = vmatprep.subr.bf16.mxu0 %v2461_v27  ;;  %2071 = vmatprep.subr.bf16.mxu1 %v2495_v41 }
 0x64e   :  { %2041 = vmatpush1.bf16.msra.mxu0 %v2488_v39  ;;  %2073 = vmatpush1.bf16.msra.mxu1 %v2505_v47  ;;  %v1554_v47 = vld [vmem:[%s2894_s0 + $0xe0] sm:$0xff] }
 0x704   :  { %v1214_v9 = vpop.f32.mrb[12].mxu0  ;;  %v1285_v14 = vpop.f32.mrb[12].mxu1 }
 0x705   :  { %v1290_v17 = vadd.f32 %v1546_v3, %v1214_v9  ;;  %v1216_v25 = vpop.f32.mrb[13].mxu0  ;;  %v1287_v26 = vpop.f32.mrb[13].mxu1  ;;  %v1292_v52 = vadd.f32 %v1548_v46, %v1285_v14 }
 0x706   :  { %v1291_v30 = vadd.f32 %v1547_v8, %v1216_v25  ;;  %v1293_v45 = vadd.f32 %v1549_v42, %v1287_v26 }
 0x707   :  { %v1550_v33 = vmul.f32 -1.442695, %v1290_v17 }
 0x708   :  { %v1551_v37 = vmul.f32 -1.442695, %v1291_v30  ;;  %v1552_v48 = vmul.f32 -1.442695, %v1293_v45 }
 0x709   :  { %2171 = vpow2.f32 %v1550_v33 }
 0x70a   :  { %2173 = vpow2.f32 %v1551_v37 }
 0x70b   :  { %2175 = vpow2.f32 %v1552_v48 }
 0x70c   :  { %2177 = vtanh.f32 %v1292_v52 }
 0x713   :  { %v2172_v55 = vpop.eup %2171 }
 0x714   :  { %v2174_v58 = vpop.eup %2173  ;;  %v1297_v62 = vadd.f32 1.0, %v2172_v55 }
 0x715   :  { %v1303_v0 = vadd.f32 1.0, %v2174_v58  ;;  %v2176_v7 = vpop.eup %2175 }
 0x716   :  { %2179 = vrcp.f32 %v1297_v62  ;;  %v2178_v10 = vpop.eup %2177  ;;  %v1310_v27 = vadd.f32 1.0, %v2176_v7 }
 0x717   :  { %2181 = vrcp.f32 %v1303_v0 }
 0x718   :  { %2183 = vrcp.f32 %v1310_v27 }
 0x720   :  { %v2180_v15 = vpop.eup %2179 }
 0x721   :  { %v2182_v18 = vpop.eup %2181  ;;  %v1314_v24 = vmul.f32 %v2180_v15, %v2178_v10 }
 0x722   :  { %v1313_v31 = vmul.f32 %v2182_v18, %v2824_v19  ;;  %v2184_v39 = vpop.eup %2183 }
 0x724   :  { %v1315_v32 = vadd.f32 %v1314_v24, %v1313_v31 }
 0x726   :  { %2185 = vtanh.f32 %v1315_v32 }
 0x730   :  { %v2186_v40 = vpop.eup %2185 }
 0x731   :  { %v1317_v41 = vmul.f32 %v2186_v40, %v2184_v39 }
 0x733   :  { %1553 = vst [vmem:[%s2895_s2 + $0x30] sm:$0xff] %v1317_v41  ;;  %1390 = vmatmul.mubr.f32.vlgmr.msra.gmra.mrb[14].mxu0 %v1317_v41  ;;  %1461 = vmatmul.mubr.f32.vlgmr.msra.gmra.mrb[14].mxu1 %v1317_v41 }
 0x806   :  { %v1391_v38 = vpop.f32.mrb[14].mxu0  ;;  %v1462_v43 = vpop.f32.mrb[14].mxu1 }
 0x807   :  { %v1467_v28 = vadd.f32 %v1554_v47, %v1391_v38  ;;  %v1393_v29 = vpop.f32.mrb[15].mxu0  ;;  %v1464_v34 = vpop.f32.mrb[15].mxu1  ;;  %v1469_v4 = vadd.f32 %v1556_v53, %v1462_v43 }
 0x808   :  { %v1468_v35 = vadd.f32 %v1555_v23, %v1393_v29  ;;  %v1470_v51 = vadd.f32 %v1557_v50, %v1464_v34 }
 0x809   :  { %v1558_v44 = vmul.f32 -1.442695, %v1467_v28 }
 0x80a   :  { %v1559_v49 = vmul.f32 -1.442695, %v1468_v35  ;;  %v1560_v54 = vmul.f32 -1.442695, %v1470_v51 }
 0x80b   :  { %2187 = vpow2.f32 %v1558_v44 }
 0x80c   :  { %2189 = vpow2.f32 %v1559_v49 }
 0x80d   :  { %2191 = vpow2.f32 %v1560_v54 }
 0x80e   :  { %2193 = vtanh.f32 %v1469_v4 }
 0x815   :  { %v2188_v22 = vpop.eup %2187 }
 0x816   :  { %v2190_v56 = vpop.eup %2189  ;;  %v1474_v57 = vadd.f32 1.0, %v2188_v22 }
 0x817   :  { %v1480_v59 = vadd.f32 1.0, %v2190_v56  ;;  %v2192_v60 = vpop.eup %2191 }
 0x818   :  { %2195 = vrcp.f32 %v1474_v57  ;;  %v2194_v61 = vpop.eup %2193  ;;  %v1487_v5 = vadd.f32 1.0, %v2192_v60 }
 0x819   :  { %2197 = vrcp.f32 %v1480_v59 }
 0x81a   :  { %2199 = vrcp.f32 %v1487_v5 }
 0x822   :  { %v2196_v63 = vpop.eup %2195 }
 0x823   :  { %v2198_v1 = vpop.eup %2197  ;;  %v1491_v2 = vmul.f32 %v2196_v63, %v2194_v61 }
 0x824   :  { %v1490_v6 = vmul.f32 %v2198_v1, %v1315_v32  ;;  %v2200_v12 = vpop.eup %2199 }
 0x826   :  { %v1492_v11 = vadd.f32 %v1491_v2, %v1490_v6 }
 0x828   :  { %2201 = vtanh.f32 %v1492_v11 }
 0x832   :  { %v2202_v13 = vpop.eup %2201 }
 0x833   :  { %v1494_v16 = vmul.f32 %v2202_v13, %v2200_v12 }
 0x835   :  { %1561 = vst [vmem:[%s2895_s2 + $0x38] sm:$0xff] %v1494_v16 }

</bundles_post_ra>
